<compile_context>
chip_gen: v7x
topology: tpu7x:2x2x1
jax: 0.10.0
libtpu: 0.0.40
codegen_flags: <defaults>
</compile_context>

<pallas_src>
import math
import functools

import jax
import jax.numpy as jnp
from jax.experimental import pallas as pl
from jax.experimental.pallas import tpu as pltpu


# ----------------------------- in-kernel helpers -----------------------------

def _erf(z):
    # Abramowitz & Stegun 7.1.26 polynomial, max abs error ~1.5e-7 (f32 level).
    # Avoids relying on an erf primitive lowering inside Mosaic.
    a1, a2, a3, a4, a5 = 0.254829592, -0.284496736, 1.421413741, -1.453152027, 1.061405429
    p = 0.3275911
    za = jnp.abs(z)
    t = 1.0 / (1.0 + p * za)
    poly = ((((a5 * t + a4) * t + a3) * t + a2) * t + a1) * t
    y = 1.0 - poly * jnp.exp(-(za * za))
    return jnp.where(z >= 0, y, -y)


def _gelu_exact(x):
    # Exact (erf) GELU, matching torch.nn.GELU default.
    return 0.5 * x * (1.0 + _erf(x * (1.0 / math.sqrt(2.0))))


def _layernorm(x, g, b, eps=1e-5):
    # x: (T, D) f32; g, b: (1, D)
    mu = jnp.mean(x, axis=-1, keepdims=True)
    xc = x - mu
    var = jnp.mean(xc * xc, axis=-1, keepdims=True)
    return xc * jax.lax.rsqrt(var + eps) * g + b


# ----------------------------- Pallas kernels -----------------------------

def _embed_conv_kernel(feat_ref, sinu_ref, w_in_ref, b_in_ref, app_ref,
                       pad_ref, conv_w_ref, conv_b_ref, o_ref):
    """Fused: input linear -> append time token -> depthwise conv -> GELU -> +residual."""
    feat = feat_ref[0].astype(jnp.float32)                                 # (T, F)
    x_in = jnp.dot(feat, w_in_ref[...],
                   preferred_element_type=jnp.float32) + b_in_ref[...]     # (T, D)
    # Append the learned-sinusoidal time token as an extra row.  `app` is the
    # (T+1, T) selector [[I_T], [0]]; `sinu` holds the token at the last row and
    # zeros elsewhere, so this is a plain matmul + add (no unaligned in-kernel
    # concatenation).
    x = jnp.dot(app_ref[...], x_in, preferred_element_type=jnp.float32) \
        + sinu_ref[0].astype(jnp.float32)                                  # (T+1, D)
    T1 = x.shape[0]

    # Depthwise conv over time.  A single selector matmul builds the 'same'
    # zero-padded slab (T1 + K - 1, D); each tap is then a static sublane slice
    # plus a VPU multiply-add (no per-tap MXU work).
    x_pad = jnp.dot(pad_ref[...], x, preferred_element_type=jnp.float32)   # (T1+K-1, D)
    K = conv_w_ref.shape[0]
    acc = jnp.zeros(x.shape, jnp.float32)
    for k in range(K):  # small static unroll over kernel taps
        acc = acc + x_pad[k:k + T1, :] * conv_w_ref[k][None, :]
    acc = acc + conv_b_ref[...]
    o_ref[0] = (_gelu_exact(acc) + x).astype(o_ref.dtype)                  # conv_embed(x) + x


def _layer_kernel(x_ref, ln1g_ref, ln1b_ref, wqkv_ref, bqkv_ref, wo_ref, bo_ref,
                  ln2g_ref, ln2b_ref, wff1_ref, bff1_ref, wff2_ref, bff2_ref,
                  o_ref, *, n_heads, d_head, n_non_bias):
    """One full (pre-LN) transformer layer for a single batch element, fully fused."""
    x = x_ref[0].astype(jnp.float32)                                       # (T, D)
    T = x.shape[0]
    D = x.shape[1]
    hd = n_heads * d_head
    scale = 1.0 / math.sqrt(d_head)

    # --- attention block ---
    h = _layernorm(x, ln1g_ref[...], ln1b_ref[...])
    qkv = jnp.dot(h, wqkv_ref[...],
                  preferred_element_type=jnp.float32) + bqkv_ref[...]      # (T, 3*H*Dh)

    # ALiBi bias generated in-kernel (no (H,T,T) HBM array, no per-step re-DMA).
    # Masked distance computed once and reused by every head.
    ri = jax.lax.broadcasted_iota(jnp.int32, (T, T), 0)
    ci = jax.lax.broadcasted_iota(jnp.int32, (T, T), 1)
    dist = -jnp.abs((ri - ci).astype(jnp.float32))
    nb = T - n_non_bias
    bias_mask = jnp.logical_and(ri < nb, ci < nb)
    masked_dist = jnp.where(bias_mask, dist, 0.0)                          # (T, T)

    ctx = jnp.zeros((T, D), jnp.float32)   # accumulated output projection of all heads
    for hh in range(n_heads):  # static unroll over heads (all heads per grid step)
        q = qkv[:, hh * d_head:(hh + 1) * d_head] * scale                  # fold softmax scale
        k = qkv[:, hd + hh * d_head: hd + (hh + 1) * d_head]
        v = qkv[:, 2 * hd + hh * d_head: 2 * hd + (hh + 1) * d_head]
        slope = 2.0 ** (-8.0 * (hh + 1) / n_heads)
        s = jax.lax.dot_general(q, k, (((1,), (1,)), ((), ())),
                                preferred_element_type=jnp.float32) + slope * masked_dist
        s = s - jnp.max(s, axis=-1, keepdims=True)
        p = jnp.exp(s)
        p = p * pl.reciprocal(jnp.sum(p, axis=-1, keepdims=True), approx=True)
        attn = jnp.dot(p, v, preferred_element_type=jnp.float32)           # (T, Dh)
        # Fold the output projection per head (avoids (T,H,Dh)->(T,H*Dh) reshape).
        ctx = ctx + jnp.dot(attn, wo_ref[hh * d_head:(hh + 1) * d_head, :],
                            preferred_element_type=jnp.float32)
    x = x + ctx + bo_ref[...]                                              # fused residual

    # --- feed-forward block ---
    h = _layernorm(x, ln2g_ref[...], ln2b_ref[...])
    h = jnp.dot(h, wff1_ref[...], preferred_element_type=jnp.float32) + bff1_ref[...]
    h = _gelu_exact(h)
    x = x + jnp.dot(h, wff2_ref[...],
                    preferred_element_type=jnp.float32) + bff2_ref[...]    # fused residual
    o_ref[0] = x.astype(o_ref.dtype)


def _final_kernel(x_ref, g_ref, b_ref, w_ref, bias_ref, o_ref):
    """Fused final LayerNorm + prediction head (lane-padded output)."""
    x = x_ref[0].astype(jnp.float32)
    h = _layernorm(x, g_ref[...], b_ref[...])
    o_ref[0] = (jnp.dot(h, w_ref[...], preferred_element_type=jnp.float32)
                + bias_ref[...]).astype(o_ref.dtype)


# ----------------------------- kernel wrappers -----------------------------

def _rep2(shape):
    # weight block replicated across the batch grid axis
    return pl.BlockSpec(shape, lambda b: (0, 0))


def embed_conv_fused(feat, sinu_pad, w_in, b_in, app, pad_sel, conv_w, conv_b):
    B, T, F = feat.shape
    T1, D = sinu_pad.shape[1], sinu_pad.shape[2]
    K = conv_w.shape[0]
    Tp = pad_sel.shape[0]
    return pl.pallas_call(
        _embed_conv_kernel,
        out_shape=jax.ShapeDtypeStruct((B, T1, D), jnp.float32),
        grid=(B,),
        in_specs=[
            pl.BlockSpec((1, T, F), lambda b: (b, 0, 0)),
            pl.BlockSpec((1, T1, D), lambda b: (b, 0, 0)),
            _rep2((F, D)),
            _rep2((1, D)),
            _rep2((T1, T)),
            _rep2((Tp, T1)),
            _rep2((K, D)),
            _rep2((1, D)),
        ],
        out_specs=pl.BlockSpec((1, T1, D), lambda b: (b, 0, 0)),
        compiler_params=pltpu.CompilerParams(dimension_semantics=("parallel",)),
    )(feat, sinu_pad, w_in, b_in.reshape(1, D), app, pad_sel, conv_w, conv_b.reshape(1, D))


def transformer_layer(x, lyr, *, n_heads, d_head, n_non_bias):
    B, T1, D = x.shape
    hd = n_heads * d_head
    dff = lyr["w_ff1"].shape[1]
    kernel = functools.partial(_layer_kernel, n_heads=n_heads, d_head=d_head,
                               n_non_bias=n_non_bias)
    return pl.pallas_call(
        kernel,
        out_shape=jax.ShapeDtypeStruct((B, T1, D), x.dtype),
        grid=(B,),
        in_specs=[
            pl.BlockSpec((1, T1, D), lambda b: (b, 0, 0)),
            _rep2((1, D)), _rep2((1, D)),
            _rep2((D, 3 * hd)), _rep2((1, 3 * hd)),
            _rep2((hd, D)), _rep2((1, D)),
            _rep2((1, D)), _rep2((1, D)),
            _rep2((D, dff)), _rep2((1, dff)),
            _rep2((dff, D)), _rep2((1, D)),
        ],
        out_specs=pl.BlockSpec((1, T1, D), lambda b: (b, 0, 0)),
        compiler_params=pltpu.CompilerParams(dimension_semantics=("parallel",)),
    )(x,
      lyr["ln1_g"].reshape(1, D), lyr["ln1_b"].reshape(1, D),
      lyr["w_qkv"], lyr["b_qkv"].reshape(1, 3 * hd),
      lyr["w_o"], lyr["b_o"].reshape(1, D),
      lyr["ln2_g"].reshape(1, D), lyr["ln2_b"].reshape(1, D),
      lyr["w_ff1"], lyr["b_ff1"].reshape(1, dff),
      lyr["w_ff2"], lyr["b_ff2"].reshape(1, D))


def final_projection(x, ln_g, ln_b, w_pred, b_pred):
    B, T1, D = x.shape
    n_out = w_pred.shape[1]
    npad = max(128, ((n_out + 127) // 128) * 128)      # lane-dense output slab
    wp = jnp.zeros((D, npad), w_pred.dtype).at[:, :n_out].set(w_pred)
    bp = jnp.zeros((1, npad), b_pred.dtype).at[:, :n_out].set(b_pred.reshape(1, n_out))
    out = pl.pallas_call(
        _final_kernel,
        out_shape=jax.ShapeDtypeStruct((B, T1, npad), x.dtype),
        grid=(B,),
        in_specs=[
            pl.BlockSpec((1, T1, D), lambda b: (b, 0, 0)),
            _rep2((1, D)), _rep2((1, D)),
            _rep2((D, npad)), _rep2((1, npad)),
        ],
        out_specs=pl.BlockSpec((1, T1, npad), lambda b: (b, 0, 0)),
        compiler_params=pltpu.CompilerParams(dimension_semantics=("parallel",)),
    )(x, ln_g.reshape(1, D), ln_b.reshape(1, D), wp, bp)
    return out[..., :n_out]


# ----------------------------- model definition -----------------------------

CFG = dict(
    n_tokens=10, n_style_tokens=5, n_embeddings=16, n_mels=8,
    n_dim=32, n_heads=4, n_dim_head=8, n_dim_ffn=64, n_layers=2,
    conv_kernel=31, n_non_bias_tokens=1,
)


def init_params(key, cfg):
    keys = iter(jax.random.split(key, 64))
    nd, nh, dh, dff = cfg["n_dim"], cfg["n_heads"], cfg["n_dim_head"], cfg["n_dim_ffn"]
    in_feat = cfg["n_embeddings"] + 2 * cfg["n_mels"]

    def nrm(shape, s=0.02):
        return (s * jax.random.normal(next(keys), shape)).astype(jnp.float32)

    p = {
        "token_emb": nrm((cfg["n_tokens"], cfg["n_embeddings"]), 1.0),
        "style_emb": nrm((cfg["n_style_tokens"], cfg["n_embeddings"]), 1.0),
        "w_in": nrm((in_feat, nd)), "b_in": jnp.zeros((nd,), jnp.float32),
        "sinu_w": nrm((nd // 2,), 1.0),
        "conv_w": nrm((cfg["conv_kernel"], nd)), "conv_b": jnp.zeros((nd,), jnp.float32),
        "w_pred": nrm((nd, cfg["n_mels"])), "b_pred": jnp.zeros((cfg["n_mels"],), jnp.float32),
        "ln_f_g": jnp.ones((nd,), jnp.float32), "ln_f_b": jnp.zeros((nd,), jnp.float32),
        "layers": [],
    }
    for _ in range(cfg["n_layers"]):
        p["layers"].append({
            "ln1_g": jnp.ones((nd,), jnp.float32), "ln1_b": jnp.zeros((nd,), jnp.float32),
            "w_qkv": nrm((nd, 3 * nh * dh)), "b_qkv": jnp.zeros((3 * nh * dh,), jnp.float32),
            "w_o": nrm((nh * dh, nd)), "b_o": jnp.zeros((nd,), jnp.float32),
            "ln2_g": jnp.ones((nd,), jnp.float32), "ln2_b": jnp.zeros((nd,), jnp.float32),
            "w_ff1": nrm((nd, dff)), "b_ff1": jnp.zeros((dff,), jnp.float32),
            "w_ff2": nrm((dff, nd)), "b_ff2": jnp.zeros((nd,), jnp.float32),
        })
    return p


def conv_pad_matrix(T1, K):
    """P[r, t] = 1 iff r == t + K//2 : builds the 'same' zero-padded slab via one matmul."""
    pad = K // 2
    Tp = T1 + K - 1
    r = jnp.arange(Tp)[:, None]
    t = jnp.arange(T1)[None, :]
    return (r == t + pad).astype(jnp.float32)


def audio_predictor_forward(params, tokens, tokens_style, audio, audio_noizy, times, cfg=CFG):
    B, T = tokens.shape
    nd, nh, dh = cfg["n_dim"], cfg["n_heads"], cfg["n_dim_head"]
    T1 = T + 1

    # Embedding gathers + feature concat (tiny glue, plain JAX).
    tok_e = params["token_emb"][tokens] + params["style_emb"][tokens_style]     # (B,T,E)
    feat = jnp.concatenate([tok_e, audio, audio_noizy], axis=-1)                # (B,T,E+2M)

    # LearnedSinusoidalPosEmb on times -> one extra token at sequence position T.
    freqs = times[:, None] * params["sinu_w"][None, :] * (2.0 * math.pi)        # (B, D/2)
    sinu = jnp.concatenate([jnp.sin(freqs), jnp.cos(freqs)], axis=-1)           # (B, D)
    sinu_pad = jnp.zeros((B, T1, nd), jnp.float32).at[:, T, :].set(sinu)        # (B, T+1, D)

    # Constants for the fused embed+conv kernel.
    app = jnp.eye(T1, T, dtype=jnp.float32)                                     # [[I_T],[0]]
    pad_sel = conv_pad_matrix(T1, cfg["conv_kernel"])                           # (T1+K-1, T1)

    # Fused: input linear + time-token append + ConvPositionEmbed + GELU + residual.
    x = embed_conv_fused(feat, sinu_pad, params["w_in"], params["b_in"],
                         app, pad_sel, params["conv_w"], params["conv_b"])      # (B, T+1, D)

    # Transformer: one fused Pallas kernel per layer.
    for lyr in params["layers"]:
        x = transformer_layer(x, lyr, n_heads=nh, d_head=dh,
                              n_non_bias=cfg["n_non_bias_tokens"])

    # Fused final LayerNorm + prediction head (lane-padded output), then drop
    # the appended time token.
    out = final_projection(x, params["ln_f_g"], params["ln_f_b"],
                           params["w_pred"], params["b_pred"])                  # (B, T+1, n_mels)
    return out[:, :T, :]                                                        # (B, T, n_mels)


# ----------------------------- main -----------------------------

if __name__ == "__main__":
    key = jax.random.PRNGKey(0)
    k_par, k_tok, k_sty, k_aud, k_noz, k_t = jax.random.split(key, 6)

    params = init_params(k_par, CFG)

    B, T = 2, 8
    tokens = jax.random.randint(k_tok, (B, T), 0, CFG["n_tokens"], dtype=jnp.int32)
    tokens_style = jax.random.randint(k_sty, (B, T), 0, CFG["n_style_tokens"], dtype=jnp.int32)
    audio = jax.random.normal(k_aud, (B, T, CFG["n_mels"]), dtype=jnp.float32)
    audio_noizy = jax.random.normal(k_noz, (B, T, CFG["n_mels"]), dtype=jnp.float32)
    times = jax.random.uniform(k_t, (B,), dtype=jnp.float32)

    fwd = jax.jit(audio_predictor_forward)
    out = fwd(params, tokens, tokens_style, audio, audio_noizy, times)
    out = jax.block_until_ready(out)
    assert out.shape == (B, T, CFG["n_mels"]), out.shape
    print("KERNEL_OK")
</pallas_src>

<mosaic_0001>
module attributes {stable_mosaic.version = 11 : i64} {
  func.func @_embed_conv_kernel(%arg0: i32, %arg1: memref<1x8x32xf32, #tpu.memory_space<vmem>>, %arg2: memref<1x9x32xf32, #tpu.memory_space<vmem>>, %arg3: memref<32x32xf32, #tpu.memory_space<vmem>>, %arg4: memref<1x32xf32, #tpu.memory_space<vmem>>, %arg5: memref<9x8xf32, #tpu.memory_space<vmem>>, %arg6: memref<39x9xf32, #tpu.memory_space<vmem>>, %arg7: memref<31x32xf32, #tpu.memory_space<vmem>>, %arg8: memref<1x32xf32, #tpu.memory_space<vmem>>, %arg9: memref<1x9x32xf32, #tpu.memory_space<vmem>>) attributes {dimension_semantics = [#tpu.dimension_semantics<parallel>], iteration_bounds = array<i64: 2>, scalar_prefetch = 0 : i64, scratch_operands = 0 : i64, tpu.core_type = #tpu.core_type<tc>, window_params = [{transform_indices = @transform_0, window_bounds = array<i64: 1, 8, 32>}, {transform_indices = @transform_1, window_bounds = array<i64: 1, 9, 32>}, {pipeline_mode = #tpu.pipeline_mode<synchronous>, transform_indices = @transform_2, window_bounds = array<i64: 32, 32>}, {pipeline_mode = #tpu.pipeline_mode<synchronous>, transform_indices = @transform_3, window_bounds = array<i64: 1, 32>}, {pipeline_mode = #tpu.pipeline_mode<synchronous>, transform_indices = @transform_4, window_bounds = array<i64: 9, 8>}, {pipeline_mode = #tpu.pipeline_mode<synchronous>, transform_indices = @transform_5, window_bounds = array<i64: 39, 9>}, {pipeline_mode = #tpu.pipeline_mode<synchronous>, transform_indices = @transform_6, window_bounds = array<i64: 31, 32>}, {pipeline_mode = #tpu.pipeline_mode<synchronous>, transform_indices = @transform_7, window_bounds = array<i64: 1, 32>}, {transform_indices = @transform_8, window_bounds = array<i64: 1, 9, 32>}]} {
    %c0 = arith.constant 0 : index
    %c0_0 = arith.constant 0 : index
    %c0_1 = arith.constant 0 : index
    %0 = vector.load %arg1[%c0, %c0_0, %c0_1] : memref<1x8x32xf32, #tpu.memory_space<vmem>>, vector<1x8x32xf32>
    %1 = vector.shape_cast %0 : vector<1x8x32xf32> to vector<8x32xf32>
    %c0_2 = arith.constant 0 : index
    %c0_3 = arith.constant 0 : index
    %2 = vector.load %arg3[%c0_2, %c0_3] : memref<32x32xf32, #tpu.memory_space<vmem>>, vector<32x32xf32>
    %cst = arith.constant dense<0.000000e+00> : vector<8x32xf32>
    %3 = tpu.matmul %1, %2, %cst {dimension_numbers = #tpu.dot_dimension_numbers<[1], [0], [0], [1], [0, 0, 1, 1], [], []>} : vector<8x32xf32>, vector<32x32xf32>, vector<8x32xf32> -> vector<8x32xf32>
    %c0_4 = arith.constant 0 : index
    %c0_5 = arith.constant 0 : index
    %4 = vector.load %arg4[%c0_4, %c0_5] : memref<1x32xf32, #tpu.memory_space<vmem>>, vector<1x32xf32>
    %5 = vector.broadcast %4 : vector<1x32xf32> to vector<8x32xf32>
    %6 = arith.addf %3, %5 : vector<8x32xf32>
    %c0_6 = arith.constant 0 : index
    %c0_7 = arith.constant 0 : index
    %7 = vector.load %arg5[%c0_6, %c0_7] : memref<9x8xf32, #tpu.memory_space<vmem>>, vector<9x8xf32>
    %cst_8 = arith.constant dense<0.000000e+00> : vector<9x32xf32>
    %8 = tpu.matmul %7, %6, %cst_8 {dimension_numbers = #tpu.dot_dimension_numbers<[1], [0], [0], [1], [0, 0, 1, 1], [], []>} : vector<9x8xf32>, vector<8x32xf32>, vector<9x32xf32> -> vector<9x32xf32>
    %c0_9 = arith.constant 0 : index
    %c0_10 = arith.constant 0 : index
    %c0_11 = arith.constant 0 : index
    %9 = vector.load %arg2[%c0_9, %c0_10, %c0_11] : memref<1x9x32xf32, #tpu.memory_space<vmem>>, vector<1x9x32xf32>
    %10 = vector.shape_cast %9 : vector<1x9x32xf32> to vector<9x32xf32>
    %11 = arith.addf %8, %10 : vector<9x32xf32>
    %c0_12 = arith.constant 0 : index
    %c0_13 = arith.constant 0 : index
    %12 = vector.load %arg6[%c0_12, %c0_13] : memref<39x9xf32, #tpu.memory_space<vmem>>, vector<39x9xf32>
    %cst_14 = arith.constant dense<0.000000e+00> : vector<39x32xf32>
    %13 = tpu.matmul %12, %11, %cst_14 {dimension_numbers = #tpu.dot_dimension_numbers<[1], [0], [0], [1], [0, 0, 1, 1], [], []>} : vector<39x9xf32>, vector<9x32xf32>, vector<39x32xf32> -> vector<39x32xf32>
    %cst_15 = arith.constant 0.000000e+00 : f32
    %14 = vector.broadcast %cst_15 : f32 to vector<9x32xf32>
    %15 = vector.extract_strided_slice %13 {offsets = [0, 0], sizes = [9, 32], strides = [1, 1]} : vector<39x32xf32> to vector<9x32xf32>
    %c0_16 = arith.constant 0 : index
    %c0_17 = arith.constant 0 : index
    %16 = vector.load %arg7[%c0_16, %c0_17] : memref<31x32xf32, #tpu.memory_space<vmem>>, vector<1x32xf32>
    %17 = vector.shape_cast %16 : vector<1x32xf32> to vector<32xf32>
    %18 = vector.shape_cast %17 : vector<32xf32> to vector<1x32xf32>
    %19 = vector.broadcast %18 : vector<1x32xf32> to vector<9x32xf32>
    %20 = arith.mulf %15, %19 : vector<9x32xf32>
    %21 = arith.addf %14, %20 : vector<9x32xf32>
    %22 = vector.extract_strided_slice %13 {offsets = [1, 0], sizes = [9, 32], strides = [1, 1]} : vector<39x32xf32> to vector<9x32xf32>
    %c1 = arith.constant 1 : index
    %c0_18 = arith.constant 0 : index
    %23 = vector.load %arg7[%c1, %c0_18] : memref<31x32xf32, #tpu.memory_space<vmem>>, vector<1x32xf32>
    %24 = vector.shape_cast %23 : vector<1x32xf32> to vector<32xf32>
    %25 = vector.shape_cast %24 : vector<32xf32> to vector<1x32xf32>
    %26 = vector.broadcast %25 : vector<1x32xf32> to vector<9x32xf32>
    %27 = arith.mulf %22, %26 : vector<9x32xf32>
    %28 = arith.addf %21, %27 : vector<9x32xf32>
    %29 = vector.extract_strided_slice %13 {offsets = [2, 0], sizes = [9, 32], strides = [1, 1]} : vector<39x32xf32> to vector<9x32xf32>
    %c2 = arith.constant 2 : index
    %c0_19 = arith.constant 0 : index
    %30 = vector.load %arg7[%c2, %c0_19] : memref<31x32xf32, #tpu.memory_space<vmem>>, vector<1x32xf32>
    %31 = vector.shape_cast %30 : vector<1x32xf32> to vector<32xf32>
    %32 = vector.shape_cast %31 : vector<32xf32> to vector<1x32xf32>
    %33 = vector.broadcast %32 : vector<1x32xf32> to vector<9x32xf32>
    %34 = arith.mulf %29, %33 : vector<9x32xf32>
    %35 = arith.addf %28, %34 : vector<9x32xf32>
    %36 = vector.extract_strided_slice %13 {offsets = [3, 0], sizes = [9, 32], strides = [1, 1]} : vector<39x32xf32> to vector<9x32xf32>
    %c3 = arith.constant 3 : index
    %c0_20 = arith.constant 0 : index
    %37 = vector.load %arg7[%c3, %c0_20] : memref<31x32xf32, #tpu.memory_space<vmem>>, vector<1x32xf32>
    %38 = vector.shape_cast %37 : vector<1x32xf32> to vector<32xf32>
    %39 = vector.shape_cast %38 : vector<32xf32> to vector<1x32xf32>
    %40 = vector.broadcast %39 : vector<1x32xf32> to vector<9x32xf32>
    %41 = arith.mulf %36, %40 : vector<9x32xf32>
    %42 = arith.addf %35, %41 : vector<9x32xf32>
    %43 = vector.extract_strided_slice %13 {offsets = [4, 0], sizes = [9, 32], strides = [1, 1]} : vector<39x32xf32> to vector<9x32xf32>
    %c4 = arith.constant 4 : index
    %c0_21 = arith.constant 0 : index
    %44 = vector.load %arg7[%c4, %c0_21] : memref<31x32xf32, #tpu.memory_space<vmem>>, vector<1x32xf32>
    %45 = vector.shape_cast %44 : vector<1x32xf32> to vector<32xf32>
    %46 = vector.shape_cast %45 : vector<32xf32> to vector<1x32xf32>
    %47 = vector.broadcast %46 : vector<1x32xf32> to vector<9x32xf32>
    %48 = arith.mulf %43, %47 : vector<9x32xf32>
    %49 = arith.addf %42, %48 : vector<9x32xf32>
    %50 = vector.extract_strided_slice %13 {offsets = [5, 0], sizes = [9, 32], strides = [1, 1]} : vector<39x32xf32> to vector<9x32xf32>
    %c5 = arith.constant 5 : index
    %c0_22 = arith.constant 0 : index
    %51 = vector.load %arg7[%c5, %c0_22] : memref<31x32xf32, #tpu.memory_space<vmem>>, vector<1x32xf32>
    %52 = vector.shape_cast %51 : vector<1x32xf32> to vector<32xf32>
    %53 = vector.shape_cast %52 : vector<32xf32> to vector<1x32xf32>
    %54 = vector.broadcast %53 : vector<1x32xf32> to vector<9x32xf32>
    %55 = arith.mulf %50, %54 : vector<9x32xf32>
    %56 = arith.addf %49, %55 : vector<9x32xf32>
    %57 = vector.extract_strided_slice %13 {offsets = [6, 0], sizes = [9, 32], strides = [1, 1]} : vector<39x32xf32> to vector<9x32xf32>
    %c6 = arith.constant 6 : index
    %c0_23 = arith.constant 0 : index
    %58 = vector.load %arg7[%c6, %c0_23] : memref<31x32xf32, #tpu.memory_space<vmem>>, vector<1x32xf32>
    %59 = vector.shape_cast %58 : vector<1x32xf32> to vector<32xf32>
    %60 = vector.shape_cast %59 : vector<32xf32> to vector<1x32xf32>
    %61 = vector.broadcast %60 : vector<1x32xf32> to vector<9x32xf32>
    %62 = arith.mulf %57, %61 : vector<9x32xf32>
    %63 = arith.addf %56, %62 : vector<9x32xf32>
    %64 = vector.extract_strided_slice %13 {offsets = [7, 0], sizes = [9, 32], strides = [1, 1]} : vector<39x32xf32> to vector<9x32xf32>
    %c7 = arith.constant 7 : index
    %c0_24 = arith.constant 0 : index
    %65 = vector.load %arg7[%c7, %c0_24] : memref<31x32xf32, #tpu.memory_space<vmem>>, vector<1x32xf32>
    %66 = vector.shape_cast %65 : vector<1x32xf32> to vector<32xf32>
    %67 = vector.shape_cast %66 : vector<32xf32> to vector<1x32xf32>
    %68 = vector.broadcast %67 : vector<1x32xf32> to vector<9x32xf32>
    %69 = arith.mulf %64, %68 : vector<9x32xf32>
    %70 = arith.addf %63, %69 : vector<9x32xf32>
    %71 = vector.extract_strided_slice %13 {offsets = [8, 0], sizes = [9, 32], strides = [1, 1]} : vector<39x32xf32> to vector<9x32xf32>
    %c8 = arith.constant 8 : index
    %c0_25 = arith.constant 0 : index
    %72 = vector.load %arg7[%c8, %c0_25] : memref<31x32xf32, #tpu.memory_space<vmem>>, vector<1x32xf32>
    %73 = vector.shape_cast %72 : vector<1x32xf32> to vector<32xf32>
    %74 = vector.shape_cast %73 : vector<32xf32> to vector<1x32xf32>
    %75 = vector.broadcast %74 : vector<1x32xf32> to vector<9x32xf32>
    %76 = arith.mulf %71, %75 : vector<9x32xf32>
    %77 = arith.addf %70, %76 : vector<9x32xf32>
    %78 = vector.extract_strided_slice %13 {offsets = [9, 0], sizes = [9, 32], strides = [1, 1]} : vector<39x32xf32> to vector<9x32xf32>
    %c9 = arith.constant 9 : index
    %c0_26 = arith.constant 0 : index
    %79 = vector.load %arg7[%c9, %c0_26] : memref<31x32xf32, #tpu.memory_space<vmem>>, vector<1x32xf32>
    %80 = vector.shape_cast %79 : vector<1x32xf32> to vector<32xf32>
    %81 = vector.shape_cast %80 : vector<32xf32> to vector<1x32xf32>
    %82 = vector.broadcast %81 : vector<1x32xf32> to vector<9x32xf32>
    %83 = arith.mulf %78, %82 : vector<9x32xf32>
    %84 = arith.addf %77, %83 : vector<9x32xf32>
    %85 = vector.extract_strided_slice %13 {offsets = [10, 0], sizes = [9, 32], strides = [1, 1]} : vector<39x32xf32> to vector<9x32xf32>
    %c10 = arith.constant 10 : index
    %c0_27 = arith.constant 0 : index
    %86 = vector.load %arg7[%c10, %c0_27] : memref<31x32xf32, #tpu.memory_space<vmem>>, vector<1x32xf32>
    %87 = vector.shape_cast %86 : vector<1x32xf32> to vector<32xf32>
    %88 = vector.shape_cast %87 : vector<32xf32> to vector<1x32xf32>
    %89 = vector.broadcast %88 : vector<1x32xf32> to vector<9x32xf32>
    %90 = arith.mulf %85, %89 : vector<9x32xf32>
    %91 = arith.addf %84, %90 : vector<9x32xf32>
    %92 = vector.extract_strided_slice %13 {offsets = [11, 0], sizes = [9, 32], strides = [1, 1]} : vector<39x32xf32> to vector<9x32xf32>
    %c11 = arith.constant 11 : index
    %c0_28 = arith.constant 0 : index
    %93 = vector.load %arg7[%c11, %c0_28] : memref<31x32xf32, #tpu.memory_space<vmem>>, vector<1x32xf32>
    %94 = vector.shape_cast %93 : vector<1x32xf32> to vector<32xf32>
    %95 = vector.shape_cast %94 : vector<32xf32> to vector<1x32xf32>
    %96 = vector.broadcast %95 : vector<1x32xf32> to vector<9x32xf32>
    %97 = arith.mulf %92, %96 : vector<9x32xf32>
    %98 = arith.addf %91, %97 : vector<9x32xf32>
    %99 = vector.extract_strided_slice %13 {offsets = [12, 0], sizes = [9, 32], strides = [1, 1]} : vector<39x32xf32> to vector<9x32xf32>
    %c12 = arith.constant 12 : index
    %c0_29 = arith.constant 0 : index
    %100 = vector.load %arg7[%c12, %c0_29] : memref<31x32xf32, #tpu.memory_space<vmem>>, vector<1x32xf32>
    %101 = vector.shape_cast %100 : vector<1x32xf32> to vector<32xf32>
    %102 = vector.shape_cast %101 : vector<32xf32> to vector<1x32xf32>
    %103 = vector.broadcast %102 : vector<1x32xf32> to vector<9x32xf32>
    %104 = arith.mulf %99, %103 : vector<9x32xf32>
    %105 = arith.addf %98, %104 : vector<9x32xf32>
    %106 = vector.extract_strided_slice %13 {offsets = [13, 0], sizes = [9, 32], strides = [1, 1]} : vector<39x32xf32> to vector<9x32xf32>
    %c13 = arith.constant 13 : index
    %c0_30 = arith.constant 0 : index
    %107 = vector.load %arg7[%c13, %c0_30] : memref<31x32xf32, #tpu.memory_space<vmem>>, vector<1x32xf32>
    %108 = vector.shape_cast %107 : vector<1x32xf32> to vector<32xf32>
    %109 = vector.shape_cast %108 : vector<32xf32> to vector<1x32xf32>
    %110 = vector.broadcast %109 : vector<1x32xf32> to vector<9x32xf32>
    %111 = arith.mulf %106, %110 : vector<9x32xf32>
    %112 = arith.addf %105, %111 : vector<9x32xf32>
    %113 = vector.extract_strided_slice %13 {offsets = [14, 0], sizes = [9, 32], strides = [1, 1]} : vector<39x32xf32> to vector<9x32xf32>
    %c14 = arith.constant 14 : index
    %c0_31 = arith.constant 0 : index
    %114 = vector.load %arg7[%c14, %c0_31] : memref<31x32xf32, #tpu.memory_space<vmem>>, vector<1x32xf32>
    %115 = vector.shape_cast %114 : vector<1x32xf32> to vector<32xf32>
    %116 = vector.shape_cast %115 : vector<32xf32> to vector<1x32xf32>
    %117 = vector.broadcast %116 : vector<1x32xf32> to vector<9x32xf32>
    %118 = arith.mulf %113, %117 : vector<9x32xf32>
    %119 = arith.addf %112, %118 : vector<9x32xf32>
    %120 = vector.extract_strided_slice %13 {offsets = [15, 0], sizes = [9, 32], strides = [1, 1]} : vector<39x32xf32> to vector<9x32xf32>
    %c15 = arith.constant 15 : index
    %c0_32 = arith.constant 0 : index
    %121 = vector.load %arg7[%c15, %c0_32] : memref<31x32xf32, #tpu.memory_space<vmem>>, vector<1x32xf32>
    %122 = vector.shape_cast %121 : vector<1x32xf32> to vector<32xf32>
    %123 = vector.shape_cast %122 : vector<32xf32> to vector<1x32xf32>
    %124 = vector.broadcast %123 : vector<1x32xf32> to vector<9x32xf32>
    %125 = arith.mulf %120, %124 : vector<9x32xf32>
    %126 = arith.addf %119, %125 : vector<9x32xf32>
    %127 = vector.extract_strided_slice %13 {offsets = [16, 0], sizes = [9, 32], strides = [1, 1]} : vector<39x32xf32> to vector<9x32xf32>
    %c16 = arith.constant 16 : index
    %c0_33 = arith.constant 0 : index
    %128 = vector.load %arg7[%c16, %c0_33] : memref<31x32xf32, #tpu.memory_space<vmem>>, vector<1x32xf32>
    %129 = vector.shape_cast %128 : vector<1x32xf32> to vector<32xf32>
    %130 = vector.shape_cast %129 : vector<32xf32> to vector<1x32xf32>
    %131 = vector.broadcast %130 : vector<1x32xf32> to vector<9x32xf32>
    %132 = arith.mulf %127, %131 : vector<9x32xf32>
    %133 = arith.addf %126, %132 : vector<9x32xf32>
    %134 = vector.extract_strided_slice %13 {offsets = [17, 0], sizes = [9, 32], strides = [1, 1]} : vector<39x32xf32> to vector<9x32xf32>
    %c17 = arith.constant 17 : index
    %c0_34 = arith.constant 0 : index
    %135 = vector.load %arg7[%c17, %c0_34] : memref<31x32xf32, #tpu.memory_space<vmem>>, vector<1x32xf32>
    %136 = vector.shape_cast %135 : vector<1x32xf32> to vector<32xf32>
    %137 = vector.shape_cast %136 : vector<32xf32> to vector<1x32xf32>
    %138 = vector.broadcast %137 : vector<1x32xf32> to vector<9x32xf32>
    %139 = arith.mulf %134, %138 : vector<9x32xf32>
    %140 = arith.addf %133, %139 : vector<9x32xf32>
    %141 = vector.extract_strided_slice %13 {offsets = [18, 0], sizes = [9, 32], strides = [1, 1]} : vector<39x32xf32> to vector<9x32xf32>
    %c18 = arith.constant 18 : index
    %c0_35 = arith.constant 0 : index
    %142 = vector.load %arg7[%c18, %c0_35] : memref<31x32xf32, #tpu.memory_space<vmem>>, vector<1x32xf32>
    %143 = vector.shape_cast %142 : vector<1x32xf32> to vector<32xf32>
    %144 = vector.shape_cast %143 : vector<32xf32> to vector<1x32xf32>
    %145 = vector.broadcast %144 : vector<1x32xf32> to vector<9x32xf32>
    %146 = arith.mulf %141, %145 : vector<9x32xf32>
    %147 = arith.addf %140, %146 : vector<9x32xf32>
    %148 = vector.extract_strided_slice %13 {offsets = [19, 0], sizes = [9, 32], strides = [1, 1]} : vector<39x32xf32> to vector<9x32xf32>
    %c19 = arith.constant 19 : index
    %c0_36 = arith.constant 0 : index
    %149 = vector.load %arg7[%c19, %c0_36] : memref<31x32xf32, #tpu.memory_space<vmem>>, vector<1x32xf32>
    %150 = vector.shape_cast %149 : vector<1x32xf32> to vector<32xf32>
    %151 = vector.shape_cast %150 : vector<32xf32> to vector<1x32xf32>
    %152 = vector.broadcast %151 : vector<1x32xf32> to vector<9x32xf32>
    %153 = arith.mulf %148, %152 : vector<9x32xf32>
    %154 = arith.addf %147, %153 : vector<9x32xf32>
    %155 = vector.extract_strided_slice %13 {offsets = [20, 0], sizes = [9, 32], strides = [1, 1]} : vector<39x32xf32> to vector<9x32xf32>
    %c20 = arith.constant 20 : index
    %c0_37 = arith.constant 0 : index
    %156 = vector.load %arg7[%c20, %c0_37] : memref<31x32xf32, #tpu.memory_space<vmem>>, vector<1x32xf32>
    %157 = vector.shape_cast %156 : vector<1x32xf32> to vector<32xf32>
    %158 = vector.shape_cast %157 : vector<32xf32> to vector<1x32xf32>
    %159 = vector.broadcast %158 : vector<1x32xf32> to vector<9x32xf32>
    %160 = arith.mulf %155, %159 : vector<9x32xf32>
    %161 = arith.addf %154, %160 : vector<9x32xf32>
    %162 = vector.extract_strided_slice %13 {offsets = [21, 0], sizes = [9, 32], strides = [1, 1]} : vector<39x32xf32> to vector<9x32xf32>
    %c21 = arith.constant 21 : index
    %c0_38 = arith.constant 0 : index
    %163 = vector.load %arg7[%c21, %c0_38] : memref<31x32xf32, #tpu.memory_space<vmem>>, vector<1x32xf32>
    %164 = vector.shape_cast %163 : vector<1x32xf32> to vector<32xf32>
    %165 = vector.shape_cast %164 : vector<32xf32> to vector<1x32xf32>
    %166 = vector.broadcast %165 : vector<1x32xf32> to vector<9x32xf32>
    %167 = arith.mulf %162, %166 : vector<9x32xf32>
    %168 = arith.addf %161, %167 : vector<9x32xf32>
    %169 = vector.extract_strided_slice %13 {offsets = [22, 0], sizes = [9, 32], strides = [1, 1]} : vector<39x32xf32> to vector<9x32xf32>
    %c22 = arith.constant 22 : index
    %c0_39 = arith.constant 0 : index
    %170 = vector.load %arg7[%c22, %c0_39] : memref<31x32xf32, #tpu.memory_space<vmem>>, vector<1x32xf32>
    %171 = vector.shape_cast %170 : vector<1x32xf32> to vector<32xf32>
    %172 = vector.shape_cast %171 : vector<32xf32> to vector<1x32xf32>
    %173 = vector.broadcast %172 : vector<1x32xf32> to vector<9x32xf32>
    %174 = arith.mulf %169, %173 : vector<9x32xf32>
    %175 = arith.addf %168, %174 : vector<9x32xf32>
    %176 = vector.extract_strided_slice %13 {offsets = [23, 0], sizes = [9, 32], strides = [1, 1]} : vector<39x32xf32> to vector<9x32xf32>
    %c23 = arith.constant 23 : index
    %c0_40 = arith.constant 0 : index
    %177 = vector.load %arg7[%c23, %c0_40] : memref<31x32xf32, #tpu.memory_space<vmem>>, vector<1x32xf32>
    %178 = vector.shape_cast %177 : vector<1x32xf32> to vector<32xf32>
    %179 = vector.shape_cast %178 : vector<32xf32> to vector<1x32xf32>
    %180 = vector.broadcast %179 : vector<1x32xf32> to vector<9x32xf32>
    %181 = arith.mulf %176, %180 : vector<9x32xf32>
    %182 = arith.addf %175, %181 : vector<9x32xf32>
    %183 = vector.extract_strided_slice %13 {offsets = [24, 0], sizes = [9, 32], strides = [1, 1]} : vector<39x32xf32> to vector<9x32xf32>
    %c24 = arith.constant 24 : index
    %c0_41 = arith.constant 0 : index
    %184 = vector.load %arg7[%c24, %c0_41] : memref<31x32xf32, #tpu.memory_space<vmem>>, vector<1x32xf32>
    %185 = vector.shape_cast %184 : vector<1x32xf32> to vector<32xf32>
    %186 = vector.shape_cast %185 : vector<32xf32> to vector<1x32xf32>
    %187 = vector.broadcast %186 : vector<1x32xf32> to vector<9x32xf32>
    %188 = arith.mulf %183, %187 : vector<9x32xf32>
    %189 = arith.addf %182, %188 : vector<9x32xf32>
    %190 = vector.extract_strided_slice %13 {offsets = [25, 0], sizes = [9, 32], strides = [1, 1]} : vector<39x32xf32> to vector<9x32xf32>
    %c25 = arith.constant 25 : index
    %c0_42 = arith.constant 0 : index
    %191 = vector.load %arg7[%c25, %c0_42] : memref<31x32xf32, #tpu.memory_space<vmem>>, vector<1x32xf32>
    %192 = vector.shape_cast %191 : vector<1x32xf32> to vector<32xf32>
    %193 = vector.shape_cast %192 : vector<32xf32> to vector<1x32xf32>
    %194 = vector.broadcast %193 : vector<1x32xf32> to vector<9x32xf32>
    %195 = arith.mulf %190, %194 : vector<9x32xf32>
    %196 = arith.addf %189, %195 : vector<9x32xf32>
    %197 = vector.extract_strided_slice %13 {offsets = [26, 0], sizes = [9, 32], strides = [1, 1]} : vector<39x32xf32> to vector<9x32xf32>
    %c26 = arith.constant 26 : index
    %c0_43 = arith.constant 0 : index
    %198 = vector.load %arg7[%c26, %c0_43] : memref<31x32xf32, #tpu.memory_space<vmem>>, vector<1x32xf32>
    %199 = vector.shape_cast %198 : vector<1x32xf32> to vector<32xf32>
    %200 = vector.shape_cast %199 : vector<32xf32> to vector<1x32xf32>
    %201 = vector.broadcast %200 : vector<1x32xf32> to vector<9x32xf32>
    %202 = arith.mulf %197, %201 : vector<9x32xf32>
    %203 = arith.addf %196, %202 : vector<9x32xf32>
    %204 = vector.extract_strided_slice %13 {offsets = [27, 0], sizes = [9, 32], strides = [1, 1]} : vector<39x32xf32> to vector<9x32xf32>
    %c27 = arith.constant 27 : index
    %c0_44 = arith.constant 0 : index
    %205 = vector.load %arg7[%c27, %c0_44] : memref<31x32xf32, #tpu.memory_space<vmem>>, vector<1x32xf32>
    %206 = vector.shape_cast %205 : vector<1x32xf32> to vector<32xf32>
    %207 = vector.shape_cast %206 : vector<32xf32> to vector<1x32xf32>
    %208 = vector.broadcast %207 : vector<1x32xf32> to vector<9x32xf32>
    %209 = arith.mulf %204, %208 : vector<9x32xf32>
    %210 = arith.addf %203, %209 : vector<9x32xf32>
    %211 = vector.extract_strided_slice %13 {offsets = [28, 0], sizes = [9, 32], strides = [1, 1]} : vector<39x32xf32> to vector<9x32xf32>
    %c28 = arith.constant 28 : index
    %c0_45 = arith.constant 0 : index
    %212 = vector.load %arg7[%c28, %c0_45] : memref<31x32xf32, #tpu.memory_space<vmem>>, vector<1x32xf32>
    %213 = vector.shape_cast %212 : vector<1x32xf32> to vector<32xf32>
    %214 = vector.shape_cast %213 : vector<32xf32> to vector<1x32xf32>
    %215 = vector.broadcast %214 : vector<1x32xf32> to vector<9x32xf32>
    %216 = arith.mulf %211, %215 : vector<9x32xf32>
    %217 = arith.addf %210, %216 : vector<9x32xf32>
    %218 = vector.extract_strided_slice %13 {offsets = [29, 0], sizes = [9, 32], strides = [1, 1]} : vector<39x32xf32> to vector<9x32xf32>
    %c29 = arith.constant 29 : index
    %c0_46 = arith.constant 0 : index
    %219 = vector.load %arg7[%c29, %c0_46] : memref<31x32xf32, #tpu.memory_space<vmem>>, vector<1x32xf32>
    %220 = vector.shape_cast %219 : vector<1x32xf32> to vector<32xf32>
    %221 = vector.shape_cast %220 : vector<32xf32> to vector<1x32xf32>
    %222 = vector.broadcast %221 : vector<1x32xf32> to vector<9x32xf32>
    %223 = arith.mulf %218, %222 : vector<9x32xf32>
    %224 = arith.addf %217, %223 : vector<9x32xf32>
    %225 = vector.extract_strided_slice %13 {offsets = [30, 0], sizes = [9, 32], strides = [1, 1]} : vector<39x32xf32> to vector<9x32xf32>
    %c30 = arith.constant 30 : index
    %c0_47 = arith.constant 0 : index
    %226 = vector.load %arg7[%c30, %c0_47] : memref<31x32xf32, #tpu.memory_space<vmem>>, vector<1x32xf32>
    %227 = vector.shape_cast %226 : vector<1x32xf32> to vector<32xf32>
    %228 = vector.shape_cast %227 : vector<32xf32> to vector<1x32xf32>
    %229 = vector.broadcast %228 : vector<1x32xf32> to vector<9x32xf32>
    %230 = arith.mulf %225, %229 : vector<9x32xf32>
    %231 = arith.addf %224, %230 : vector<9x32xf32>
    %c0_48 = arith.constant 0 : index
    %c0_49 = arith.constant 0 : index
    %232 = vector.load %arg8[%c0_48, %c0_49] : memref<1x32xf32, #tpu.memory_space<vmem>>, vector<1x32xf32>
    %233 = vector.broadcast %232 : vector<1x32xf32> to vector<9x32xf32>
    %234 = arith.addf %231, %233 : vector<9x32xf32>
    %cst_50 = arith.constant 5.000000e-01 : f32
    %235 = vector.broadcast %cst_50 : f32 to vector<9x32xf32>
    %236 = arith.mulf %235, %234 : vector<9x32xf32>
    %cst_51 = arith.constant 0.707106769 : f32
    %237 = vector.broadcast %cst_51 : f32 to vector<9x32xf32>
    %238 = arith.mulf %234, %237 : vector<9x32xf32>
    %239 = math.absf %238 : vector<9x32xf32>
    %cst_52 = arith.constant 0.327591091 : f32
    %240 = vector.broadcast %cst_52 : f32 to vector<9x32xf32>
    %241 = arith.mulf %240, %239 : vector<9x32xf32>
    %cst_53 = arith.constant 1.000000e+00 : f32
    %242 = vector.broadcast %cst_53 : f32 to vector<9x32xf32>
    %243 = arith.addf %242, %241 : vector<9x32xf32>
    %cst_54 = arith.constant 1.000000e+00 : f32
    %244 = vector.broadcast %cst_54 : f32 to vector<9x32xf32>
    %245 = arith.divf %244, %243 : vector<9x32xf32>
    %cst_55 = arith.constant 1.06140542 : f32
    %246 = vector.broadcast %cst_55 : f32 to vector<9x32xf32>
    %247 = arith.mulf %246, %245 : vector<9x32xf32>
    %cst_56 = arith.constant -1.45315206 : f32
    %248 = vector.broadcast %cst_56 : f32 to vector<9x32xf32>
    %249 = arith.addf %247, %248 : vector<9x32xf32>
    %250 = arith.mulf %249, %245 : vector<9x32xf32>
    %cst_57 = arith.constant 1.42141378 : f32
    %251 = vector.broadcast %cst_57 : f32 to vector<9x32xf32>
    %252 = arith.addf %250, %251 : vector<9x32xf32>
    %253 = arith.mulf %252, %245 : vector<9x32xf32>
    %cst_58 = arith.constant -0.284496725 : f32
    %254 = vector.broadcast %cst_58 : f32 to vector<9x32xf32>
    %255 = arith.addf %253, %254 : vector<9x32xf32>
    %256 = arith.mulf %255, %245 : vector<9x32xf32>
    %cst_59 = arith.constant 0.254829586 : f32
    %257 = vector.broadcast %cst_59 : f32 to vector<9x32xf32>
    %258 = arith.addf %256, %257 : vector<9x32xf32>
    %259 = arith.mulf %258, %245 : vector<9x32xf32>
    %260 = arith.mulf %239, %239 : vector<9x32xf32>
    %cst_60 = arith.constant 0.000000e+00 : f32
    %261 = vector.broadcast %cst_60 : f32 to vector<9x32xf32>
    %262 = arith.subf %261, %260 : vector<9x32xf32>
    %263 = math.exp %262 : vector<9x32xf32>
    %264 = arith.mulf %259, %263 : vector<9x32xf32>
    %cst_61 = arith.constant 1.000000e+00 : f32
    %265 = vector.broadcast %cst_61 : f32 to vector<9x32xf32>
    %266 = arith.subf %265, %264 : vector<9x32xf32>
    %cst_62 = arith.constant 0.000000e+00 : f32
    %267 = vector.broadcast %cst_62 : f32 to vector<9x32xf32>
    %268 = arith.cmpf oge, %238, %267 : vector<9x32xf32>
    %cst_63 = arith.constant 0.000000e+00 : f32
    %269 = vector.broadcast %cst_63 : f32 to vector<9x32xf32>
    %270 = arith.subf %269, %266 : vector<9x32xf32>
    %271 = arith.select %268, %266, %270 : vector<9x32xi1>, vector<9x32xf32>
    %cst_64 = arith.constant 1.000000e+00 : f32
    %272 = vector.broadcast %cst_64 : f32 to vector<9x32xf32>
    %273 = arith.addf %272, %271 : vector<9x32xf32>
    %274 = arith.mulf %236, %273 : vector<9x32xf32>
    %275 = arith.addf %274, %11 : vector<9x32xf32>
    %c0_65 = arith.constant 0 : index
    %c0_66 = arith.constant 0 : index
    %c0_67 = arith.constant 0 : index
    %276 = vector.load %arg9[%c0_65, %c0_66, %c0_67] : memref<1x9x32xf32, #tpu.memory_space<vmem>>, vector<1x9x32xf32>
    %277 = vector.shape_cast %276 : vector<1x9x32xf32> to vector<9x32xf32>
    %278 = vector.shape_cast %275 : vector<9x32xf32> to vector<1x9x32xf32>
    tpu.vector_store %arg9[%c0_65, %c0_66, %c0_67], %278 {strides = array<i32>} : memref<1x9x32xf32, #tpu.memory_space<vmem>>, vector<1x9x32xf32>,
    return
  }
  func.func @transform_0(%arg0: i32) -> (i32, i32, i32) {
    %c0_i32 = arith.constant 0 : i32
    %c0_i32_0 = arith.constant 0 : i32
    %c0_i32_1 = arith.constant 0 : i32
    return %arg0, %c0_i32, %c0_i32_0 : i32, i32, i32
  }
  func.func @transform_1(%arg0: i32) -> (i32, i32, i32) {
    %c0_i32 = arith.constant 0 : i32
    %c0_i32_0 = arith.constant 0 : i32
    %c0_i32_1 = arith.constant 0 : i32
    return %arg0, %c0_i32, %c0_i32_0 : i32, i32, i32
  }
  func.func @transform_2(%arg0: i32) -> (i32, i32) {
    %c0_i32 = arith.constant 0 : i32
    %c0_i32_0 = arith.constant 0 : i32
    %c0_i32_1 = arith.constant 0 : i32
    return %c0_i32, %c0_i32_0 : i32, i32
  }
  func.func @transform_3(%arg0: i32) -> (i32, i32) {
    %c0_i32 = arith.constant 0 : i32
    %c0_i32_0 = arith.constant 0 : i32
    %c0_i32_1 = arith.constant 0 : i32
    return %c0_i32, %c0_i32_0 : i32, i32
  }
  func.func @transform_4(%arg0: i32) -> (i32, i32) {
    %c0_i32 = arith.constant 0 : i32
    %c0_i32_0 = arith.constant 0 : i32
    %c0_i32_1 = arith.constant 0 : i32
    return %c0_i32, %c0_i32_0 : i32, i32
  }
  func.func @transform_5(%arg0: i32) -> (i32, i32) {
    %c0_i32 = arith.constant 0 : i32
    %c0_i32_0 = arith.constant 0 : i32
    %c0_i32_1 = arith.constant 0 : i32
    return %c0_i32, %c0_i32_0 : i32, i32
  }
  func.func @transform_6(%arg0: i32) -> (i32, i32) {
    %c0_i32 = arith.constant 0 : i32
    %c0_i32_0 = arith.constant 0 : i32
    %c0_i32_1 = arith.constant 0 : i32
    return %c0_i32, %c0_i32_0 : i32, i32
  }
  func.func @transform_7(%arg0: i32) -> (i32, i32) {
    %c0_i32 = arith.constant 0 : i32
    %c0_i32_0 = arith.constant 0 : i32
    %c0_i32_1 = arith.constant 0 : i32
    return %c0_i32, %c0_i32_0 : i32, i32
  }
  func.func @transform_8(%arg0: i32) -> (i32, i32, i32) {
    %c0_i32 = arith.constant 0 : i32
    %c0_i32_0 = arith.constant 0 : i32
    %c0_i32_1 = arith.constant 0 : i32
    return %arg0, %c0_i32, %c0_i32_0 : i32, i32, i32
  }
}

module attributes {stable_mosaic.version = 11 : i64} {
  func.func @_layer_kernel(%arg0: i32, %arg1: memref<1x9x32xf32, #tpu.memory_space<vmem>>, %arg2: memref<1x32xf32, #tpu.memory_space<vmem>>, %arg3: memref<1x32xf32, #tpu.memory_space<vmem>>, %arg4: memref<32x96xf32, #tpu.memory_space<vmem>>, %arg5: memref<1x96xf32, #tpu.memory_space<vmem>>, %arg6: memref<32x32xf32, #tpu.memory_space<vmem>>, %arg7: memref<1x32xf32, #tpu.memory_space<vmem>>, %arg8: memref<1x32xf32, #tpu.memory_space<vmem>>, %arg9: memref<1x32xf32, #tpu.memory_space<vmem>>, %arg10: memref<32x64xf32, #tpu.memory_space<vmem>>, %arg11: memref<1x64xf32, #tpu.memory_space<vmem>>, %arg12: memref<64x32xf32, #tpu.memory_space<vmem>>, %arg13: memref<1x32xf32, #tpu.memory_space<vmem>>, %arg14: memref<1x9x32xf32, #tpu.memory_space<vmem>>) attributes {dimension_semantics = [#tpu.dimension_semantics<parallel>], iteration_bounds = array<i64: 2>, scalar_prefetch = 0 : i64, scratch_operands = 0 : i64, tpu.core_type = #tpu.core_type<tc>, window_params = [{transform_indices = @transform_0, window_bounds = array<i64: 1, 9, 32>}, {pipeline_mode = #tpu.pipeline_mode<synchronous>, transform_indices = @transform_1, window_bounds = array<i64: 1, 32>}, {pipeline_mode = #tpu.pipeline_mode<synchronous>, transform_indices = @transform_2, window_bounds = array<i64: 1, 32>}, {pipeline_mode = #tpu.pipeline_mode<synchronous>, transform_indices = @transform_3, window_bounds = array<i64: 32, 96>}, {pipeline_mode = #tpu.pipeline_mode<synchronous>, transform_indices = @transform_4, window_bounds = array<i64: 1, 96>}, {pipeline_mode = #tpu.pipeline_mode<synchronous>, transform_indices = @transform_5, window_bounds = array<i64: 32, 32>}, {pipeline_mode = #tpu.pipeline_mode<synchronous>, transform_indices = @transform_6, window_bounds = array<i64: 1, 32>}, {pipeline_mode = #tpu.pipeline_mode<synchronous>, transform_indices = @transform_7, window_bounds = array<i64: 1, 32>}, {pipeline_mode = #tpu.pipeline_mode<synchronous>, transform_indices = @transform_8, window_bounds = array<i64: 1, 32>}, {pipeline_mode = #tpu.pipeline_mode<synchronous>, transform_indices = @transform_9, window_bounds = array<i64: 32, 64>}, {pipeline_mode = #tpu.pipeline_mode<synchronous>, transform_indices = @transform_10, window_bounds = array<i64: 1, 64>}, {pipeline_mode = #tpu.pipeline_mode<synchronous>, transform_indices = @transform_11, window_bounds = array<i64: 64, 32>}, {pipeline_mode = #tpu.pipeline_mode<synchronous>, transform_indices = @transform_12, window_bounds = array<i64: 1, 32>}, {transform_indices = @transform_13, window_bounds = array<i64: 1, 9, 32>}]} {
    %c0 = arith.constant 0 : index
    %c0_0 = arith.constant 0 : index
    %c0_1 = arith.constant 0 : index
    %0 = vector.load %arg1[%c0, %c0_0, %c0_1] : memref<1x9x32xf32, #tpu.memory_space<vmem>>, vector<1x9x32xf32>
    %1 = vector.shape_cast %0 : vector<1x9x32xf32> to vector<9x32xf32>
    %c0_2 = arith.constant 0 : index
    %c0_3 = arith.constant 0 : index
    %2 = vector.load %arg2[%c0_2, %c0_3] : memref<1x32xf32, #tpu.memory_space<vmem>>, vector<1x32xf32>
    %c0_4 = arith.constant 0 : index
    %c0_5 = arith.constant 0 : index
    %3 = vector.load %arg3[%c0_4, %c0_5] : memref<1x32xf32, #tpu.memory_space<vmem>>, vector<1x32xf32>
    %cst = arith.constant dense<0.000000e+00> : vector<9xf32>
    %4 = vector.multi_reduction <add>, %1, %cst [1] : vector<9x32xf32> to vector<9xf32>
    %5 = vector.shape_cast %4 : vector<9xf32> to vector<9x1xf32>
    %cst_6 = arith.constant 3.200000e+01 : f32
    %6 = vector.broadcast %cst_6 : f32 to vector<9x1xf32>
    %7 = arith.divf %5, %6 : vector<9x1xf32>
    %8 = vector.broadcast %7 : vector<9x1xf32> to vector<9x32xf32>
    %9 = arith.subf %1, %8 : vector<9x32xf32>
    %10 = arith.mulf %9, %9 : vector<9x32xf32>
    %cst_7 = arith.constant dense<0.000000e+00> : vector<9xf32>
    %11 = vector.multi_reduction <add>, %10, %cst_7 [1] : vector<9x32xf32> to vector<9xf32>
    %12 = vector.shape_cast %11 : vector<9xf32> to vector<9x1xf32>
    %cst_8 = arith.constant 3.200000e+01 : f32
    %13 = vector.broadcast %cst_8 : f32 to vector<9x1xf32>
    %14 = arith.divf %12, %13 : vector<9x1xf32>
    %cst_9 = arith.constant 9.99999974E-6 : f32
    %15 = vector.broadcast %cst_9 : f32 to vector<9x1xf32>
    %16 = arith.addf %14, %15 : vector<9x1xf32>
    %17 = math.rsqrt %16 : vector<9x1xf32>
    %18 = vector.broadcast %17 : vector<9x1xf32> to vector<9x32xf32>
    %19 = arith.mulf %9, %18 : vector<9x32xf32>
    %20 = vector.broadcast %2 : vector<1x32xf32> to vector<9x32xf32>
    %21 = arith.mulf %19, %20 : vector<9x32xf32>
    %22 = vector.broadcast %3 : vector<1x32xf32> to vector<9x32xf32>
    %23 = arith.addf %21, %22 : vector<9x32xf32>
    %c0_10 = arith.constant 0 : index
    %c0_11 = arith.constant 0 : index
    %24 = vector.load %arg4[%c0_10, %c0_11] : memref<32x96xf32, #tpu.memory_space<vmem>>, vector<32x96xf32>
    %cst_12 = arith.constant dense<0.000000e+00> : vector<9x96xf32>
    %25 = tpu.matmul %23, %24, %cst_12 {dimension_numbers = #tpu.dot_dimension_numbers<[1], [0], [0], [1], [0, 0, 1, 1], [], []>} : vector<9x32xf32>, vector<32x96xf32>, vector<9x96xf32> -> vector<9x96xf32>
    %c0_13 = arith.constant 0 : index
    %c0_14 = arith.constant 0 : index
    %26 = vector.load %arg5[%c0_13, %c0_14] : memref<1x96xf32, #tpu.memory_space<vmem>>, vector<1x96xf32>
    %27 = vector.broadcast %26 : vector<1x96xf32> to vector<9x96xf32>
    %28 = arith.addf %25, %27 : vector<9x96xf32>
    %29 = tpu.iota {dimensions = array<i32: 0>} : vector<9x9xi32>
    %30 = tpu.iota {dimensions = array<i32: 1>} : vector<9x9xi32>
    %31 = arith.subi %29, %30 : vector<9x9xi32>
    %32 = arith.sitofp %31 : vector<9x9xi32> to vector<9x9xf32>
    %33 = math.absf %32 : vector<9x9xf32>
    %cst_15 = arith.constant 0.000000e+00 : f32
    %34 = vector.broadcast %cst_15 : f32 to vector<9x9xf32>
    %35 = arith.subf %34, %33 : vector<9x9xf32>
    %c8_i32 = arith.constant 8 : i32
    %36 = vector.broadcast %c8_i32 : i32 to vector<9x9xi32>
    %37 = arith.cmpi slt, %29, %36 : vector<9x9xi32>
    %c8_i32_16 = arith.constant 8 : i32
    %38 = vector.broadcast %c8_i32_16 : i32 to vector<9x9xi32>
    %39 = arith.cmpi slt, %30, %38 : vector<9x9xi32>
    %40 = arith.andi %37, %39 : vector<9x9xi1>
    %cst_17 = arith.constant 0.000000e+00 : f32
    %41 = vector.broadcast %cst_17 : f32 to vector<9x9xf32>
    %42 = arith.select %40, %35, %41 : vector<9x9xi1>, vector<9x9xf32>
    %cst_18 = arith.constant 0.000000e+00 : f32
    %43 = vector.broadcast %cst_18 : f32 to vector<9x32xf32>
    %44 = vector.extract_strided_slice %28 {offsets = [0, 0], sizes = [9, 8], strides = [1, 1]} : vector<9x96xf32> to vector<9x8xf32>
    %cst_19 = arith.constant 0.353553385 : f32
    %45 = vector.broadcast %cst_19 : f32 to vector<9x8xf32>
    %46 = arith.mulf %44, %45 : vector<9x8xf32>
    %47 = vector.extract_strided_slice %28 {offsets = [0, 32], sizes = [9, 8], strides = [1, 1]} : vector<9x96xf32> to vector<9x8xf32>
    %48 = vector.extract_strided_slice %28 {offsets = [0, 64], sizes = [9, 8], strides = [1, 1]} : vector<9x96xf32> to vector<9x8xf32>
    %cst_20 = arith.constant dense<0.000000e+00> : vector<9x9xf32>
    %49 = tpu.matmul %46, %47, %cst_20 {dimension_numbers = #tpu.dot_dimension_numbers<[1], [1], [0], [0], [0, 0, 1, 0], [], []>} : vector<9x8xf32>, vector<9x8xf32>, vector<9x9xf32> -> vector<9x9xf32>
    %cst_21 = arith.constant 2.500000e-01 : f32
    %50 = vector.broadcast %cst_21 : f32 to vector<9x9xf32>
    %51 = arith.mulf %50, %42 : vector<9x9xf32>
    %52 = arith.addf %49, %51 : vector<9x9xf32>
    %cst_22 = arith.constant dense<0xFF800000> : vector<9xf32>
    %53 = vector.multi_reduction <maximumf>, %52, %cst_22 [1] : vector<9x9xf32> to vector<9xf32>
    %54 = vector.shape_cast %53 : vector<9xf32> to vector<9x1xf32>
    %55 = vector.broadcast %54 : vector<9x1xf32> to vector<9x9xf32>
    %56 = arith.subf %52, %55 : vector<9x9xf32>
    %57 = math.exp %56 : vector<9x9xf32>
    %cst_23 = arith.constant dense<0.000000e+00> : vector<9xf32>
    %58 = vector.multi_reduction <add>, %57, %cst_23 [1] : vector<9x9xf32> to vector<9xf32>
    %59 = vector.shape_cast %58 : vector<9xf32> to vector<9x1xf32>
    %60 = tpu.reciprocal %59 {approx = true} : vector<9x1xf32> -> vector<9x1xf32>
    %61 = vector.broadcast %60 : vector<9x1xf32> to vector<9x9xf32>
    %62 = arith.mulf %57, %61 : vector<9x9xf32>
    %cst_24 = arith.constant dense<0.000000e+00> : vector<9x8xf32>
    %63 = tpu.matmul %62, %48, %cst_24 {dimension_numbers = #tpu.dot_dimension_numbers<[1], [0], [0], [1], [0, 0, 1, 1], [], []>} : vector<9x9xf32>, vector<9x8xf32>, vector<9x8xf32> -> vector<9x8xf32>
    %c0_25 = arith.constant 0 : index
    %c0_26 = arith.constant 0 : index
    %64 = vector.load %arg6[%c0_25, %c0_26] : memref<32x32xf32, #tpu.memory_space<vmem>>, vector<8x32xf32>
    %cst_27 = arith.constant dense<0.000000e+00> : vector<9x32xf32>
    %65 = tpu.matmul %63, %64, %cst_27 {dimension_numbers = #tpu.dot_dimension_numbers<[1], [0], [0], [1], [0, 0, 1, 1], [], []>} : vector<9x8xf32>, vector<8x32xf32>, vector<9x32xf32> -> vector<9x32xf32>
    %66 = arith.addf %43, %65 : vector<9x32xf32>
    %67 = vector.extract_strided_slice %28 {offsets = [0, 8], sizes = [9, 8], strides = [1, 1]} : vector<9x96xf32> to vector<9x8xf32>
    %cst_28 = arith.constant 0.353553385 : f32
    %68 = vector.broadcast %cst_28 : f32 to vector<9x8xf32>
    %69 = arith.mulf %67, %68 : vector<9x8xf32>
    %70 = vector.extract_strided_slice %28 {offsets = [0, 40], sizes = [9, 8], strides = [1, 1]} : vector<9x96xf32> to vector<9x8xf32>
    %71 = vector.extract_strided_slice %28 {offsets = [0, 72], sizes = [9, 8], strides = [1, 1]} : vector<9x96xf32> to vector<9x8xf32>
    %cst_29 = arith.constant dense<0.000000e+00> : vector<9x9xf32>
    %72 = tpu.matmul %69, %70, %cst_29 {dimension_numbers = #tpu.dot_dimension_numbers<[1], [1], [0], [0], [0, 0, 1, 0], [], []>} : vector<9x8xf32>, vector<9x8xf32>, vector<9x9xf32> -> vector<9x9xf32>
    %cst_30 = arith.constant 6.250000e-02 : f32
    %73 = vector.broadcast %cst_30 : f32 to vector<9x9xf32>
    %74 = arith.mulf %73, %42 : vector<9x9xf32>
    %75 = arith.addf %72, %74 : vector<9x9xf32>
    %cst_31 = arith.constant dense<0xFF800000> : vector<9xf32>
    %76 = vector.multi_reduction <maximumf>, %75, %cst_31 [1] : vector<9x9xf32> to vector<9xf32>
    %77 = vector.shape_cast %76 : vector<9xf32> to vector<9x1xf32>
    %78 = vector.broadcast %77 : vector<9x1xf32> to vector<9x9xf32>
    %79 = arith.subf %75, %78 : vector<9x9xf32>
    %80 = math.exp %79 : vector<9x9xf32>
    %cst_32 = arith.constant dense<0.000000e+00> : vector<9xf32>
    %81 = vector.multi_reduction <add>, %80, %cst_32 [1] : vector<9x9xf32> to vector<9xf32>
    %82 = vector.shape_cast %81 : vector<9xf32> to vector<9x1xf32>
    %83 = tpu.reciprocal %82 {approx = true} : vector<9x1xf32> -> vector<9x1xf32>
    %84 = vector.broadcast %83 : vector<9x1xf32> to vector<9x9xf32>
    %85 = arith.mulf %80, %84 : vector<9x9xf32>
    %cst_33 = arith.constant dense<0.000000e+00> : vector<9x8xf32>
    %86 = tpu.matmul %85, %71, %cst_33 {dimension_numbers = #tpu.dot_dimension_numbers<[1], [0], [0], [1], [0, 0, 1, 1], [], []>} : vector<9x9xf32>, vector<9x8xf32>, vector<9x8xf32> -> vector<9x8xf32>
    %c8 = arith.constant 8 : index
    %c0_34 = arith.constant 0 : index
    %87 = vector.load %arg6[%c8, %c0_34] : memref<32x32xf32, #tpu.memory_space<vmem>>, vector<8x32xf32>
    %cst_35 = arith.constant dense<0.000000e+00> : vector<9x32xf32>
    %88 = tpu.matmul %86, %87, %cst_35 {dimension_numbers = #tpu.dot_dimension_numbers<[1], [0], [0], [1], [0, 0, 1, 1], [], []>} : vector<9x8xf32>, vector<8x32xf32>, vector<9x32xf32> -> vector<9x32xf32>
    %89 = arith.addf %66, %88 : vector<9x32xf32>
    %90 = vector.extract_strided_slice %28 {offsets = [0, 16], sizes = [9, 8], strides = [1, 1]} : vector<9x96xf32> to vector<9x8xf32>
    %cst_36 = arith.constant 0.353553385 : f32
    %91 = vector.broadcast %cst_36 : f32 to vector<9x8xf32>
    %92 = arith.mulf %90, %91 : vector<9x8xf32>
    %93 = vector.extract_strided_slice %28 {offsets = [0, 48], sizes = [9, 8], strides = [1, 1]} : vector<9x96xf32> to vector<9x8xf32>
    %94 = vector.extract_strided_slice %28 {offsets = [0, 80], sizes = [9, 8], strides = [1, 1]} : vector<9x96xf32> to vector<9x8xf32>
    %cst_37 = arith.constant dense<0.000000e+00> : vector<9x9xf32>
    %95 = tpu.matmul %92, %93, %cst_37 {dimension_numbers = #tpu.dot_dimension_numbers<[1], [1], [0], [0], [0, 0, 1, 0], [], []>} : vector<9x8xf32>, vector<9x8xf32>, vector<9x9xf32> -> vector<9x9xf32>
    %cst_38 = arith.constant 1.562500e-02 : f32
    %96 = vector.broadcast %cst_38 : f32 to vector<9x9xf32>
    %97 = arith.mulf %96, %42 : vector<9x9xf32>
    %98 = arith.addf %95, %97 : vector<9x9xf32>
    %cst_39 = arith.constant dense<0xFF800000> : vector<9xf32>
    %99 = vector.multi_reduction <maximumf>, %98, %cst_39 [1] : vector<9x9xf32> to vector<9xf32>
    %100 = vector.shape_cast %99 : vector<9xf32> to vector<9x1xf32>
    %101 = vector.broadcast %100 : vector<9x1xf32> to vector<9x9xf32>
    %102 = arith.subf %98, %101 : vector<9x9xf32>
    %103 = math.exp %102 : vector<9x9xf32>
    %cst_40 = arith.constant dense<0.000000e+00> : vector<9xf32>
    %104 = vector.multi_reduction <add>, %103, %cst_40 [1] : vector<9x9xf32> to vector<9xf32>
    %105 = vector.shape_cast %104 : vector<9xf32> to vector<9x1xf32>
    %106 = tpu.reciprocal %105 {approx = true} : vector<9x1xf32> -> vector<9x1xf32>
    %107 = vector.broadcast %106 : vector<9x1xf32> to vector<9x9xf32>
    %108 = arith.mulf %103, %107 : vector<9x9xf32>
    %cst_41 = arith.constant dense<0.000000e+00> : vector<9x8xf32>
    %109 = tpu.matmul %108, %94, %cst_41 {dimension_numbers = #tpu.dot_dimension_numbers<[1], [0], [0], [1], [0, 0, 1, 1], [], []>} : vector<9x9xf32>, vector<9x8xf32>, vector<9x8xf32> -> vector<9x8xf32>
    %c16 = arith.constant 16 : index
    %c0_42 = arith.constant 0 : index
    %110 = vector.load %arg6[%c16, %c0_42] : memref<32x32xf32, #tpu.memory_space<vmem>>, vector<8x32xf32>
    %cst_43 = arith.constant dense<0.000000e+00> : vector<9x32xf32>
    %111 = tpu.matmul %109, %110, %cst_43 {dimension_numbers = #tpu.dot_dimension_numbers<[1], [0], [0], [1], [0, 0, 1, 1], [], []>} : vector<9x8xf32>, vector<8x32xf32>, vector<9x32xf32> -> vector<9x32xf32>
    %112 = arith.addf %89, %111 : vector<9x32xf32>
    %113 = vector.extract_strided_slice %28 {offsets = [0, 24], sizes = [9, 8], strides = [1, 1]} : vector<9x96xf32> to vector<9x8xf32>
    %cst_44 = arith.constant 0.353553385 : f32
    %114 = vector.broadcast %cst_44 : f32 to vector<9x8xf32>
    %115 = arith.mulf %113, %114 : vector<9x8xf32>
    %116 = vector.extract_strided_slice %28 {offsets = [0, 56], sizes = [9, 8], strides = [1, 1]} : vector<9x96xf32> to vector<9x8xf32>
    %117 = vector.extract_strided_slice %28 {offsets = [0, 88], sizes = [9, 8], strides = [1, 1]} : vector<9x96xf32> to vector<9x8xf32>
    %cst_45 = arith.constant dense<0.000000e+00> : vector<9x9xf32>
    %118 = tpu.matmul %115, %116, %cst_45 {dimension_numbers = #tpu.dot_dimension_numbers<[1], [1], [0], [0], [0, 0, 1, 0], [], []>} : vector<9x8xf32>, vector<9x8xf32>, vector<9x9xf32> -> vector<9x9xf32>
    %cst_46 = arith.constant 3.906250e-03 : f32
    %119 = vector.broadcast %cst_46 : f32 to vector<9x9xf32>
    %120 = arith.mulf %119, %42 : vector<9x9xf32>
    %121 = arith.addf %118, %120 : vector<9x9xf32>
    %cst_47 = arith.constant dense<0xFF800000> : vector<9xf32>
    %122 = vector.multi_reduction <maximumf>, %121, %cst_47 [1] : vector<9x9xf32> to vector<9xf32>
    %123 = vector.shape_cast %122 : vector<9xf32> to vector<9x1xf32>
    %124 = vector.broadcast %123 : vector<9x1xf32> to vector<9x9xf32>
    %125 = arith.subf %121, %124 : vector<9x9xf32>
    %126 = math.exp %125 : vector<9x9xf32>
    %cst_48 = arith.constant dense<0.000000e+00> : vector<9xf32>
    %127 = vector.multi_reduction <add>, %126, %cst_48 [1] : vector<9x9xf32> to vector<9xf32>
    %128 = vector.shape_cast %127 : vector<9xf32> to vector<9x1xf32>
    %129 = tpu.reciprocal %128 {approx = true} : vector<9x1xf32> -> vector<9x1xf32>
    %130 = vector.broadcast %129 : vector<9x1xf32> to vector<9x9xf32>
    %131 = arith.mulf %126, %130 : vector<9x9xf32>
    %cst_49 = arith.constant dense<0.000000e+00> : vector<9x8xf32>
    %132 = tpu.matmul %131, %117, %cst_49 {dimension_numbers = #tpu.dot_dimension_numbers<[1], [0], [0], [1], [0, 0, 1, 1], [], []>} : vector<9x9xf32>, vector<9x8xf32>, vector<9x8xf32> -> vector<9x8xf32>
    %c24 = arith.constant 24 : index
    %c0_50 = arith.constant 0 : index
    %133 = vector.load %arg6[%c24, %c0_50] : memref<32x32xf32, #tpu.memory_space<vmem>>, vector<8x32xf32>
    %cst_51 = arith.constant dense<0.000000e+00> : vector<9x32xf32>
    %134 = tpu.matmul %132, %133, %cst_51 {dimension_numbers = #tpu.dot_dimension_numbers<[1], [0], [0], [1], [0, 0, 1, 1], [], []>} : vector<9x8xf32>, vector<8x32xf32>, vector<9x32xf32> -> vector<9x32xf32>
    %135 = arith.addf %112, %134 : vector<9x32xf32>
    %136 = arith.addf %1, %135 : vector<9x32xf32>
    %c0_52 = arith.constant 0 : index
    %c0_53 = arith.constant 0 : index
    %137 = vector.load %arg7[%c0_52, %c0_53] : memref<1x32xf32, #tpu.memory_space<vmem>>, vector<1x32xf32>
    %138 = vector.broadcast %137 : vector<1x32xf32> to vector<9x32xf32>
    %139 = arith.addf %136, %138 : vector<9x32xf32>
    %c0_54 = arith.constant 0 : index
    %c0_55 = arith.constant 0 : index
    %140 = vector.load %arg8[%c0_54, %c0_55] : memref<1x32xf32, #tpu.memory_space<vmem>>, vector<1x32xf32>
    %c0_56 = arith.constant 0 : index
    %c0_57 = arith.constant 0 : index
    %141 = vector.load %arg9[%c0_56, %c0_57] : memref<1x32xf32, #tpu.memory_space<vmem>>, vector<1x32xf32>
    %cst_58 = arith.constant dense<0.000000e+00> : vector<9xf32>
    %142 = vector.multi_reduction <add>, %139, %cst_58 [1] : vector<9x32xf32> to vector<9xf32>
    %143 = vector.shape_cast %142 : vector<9xf32> to vector<9x1xf32>
    %cst_59 = arith.constant 3.200000e+01 : f32
    %144 = vector.broadcast %cst_59 : f32 to vector<9x1xf32>
    %145 = arith.divf %143, %144 : vector<9x1xf32>
    %146 = vector.broadcast %145 : vector<9x1xf32> to vector<9x32xf32>
    %147 = arith.subf %139, %146 : vector<9x32xf32>
    %148 = arith.mulf %147, %147 : vector<9x32xf32>
    %cst_60 = arith.constant dense<0.000000e+00> : vector<9xf32>
    %149 = vector.multi_reduction <add>, %148, %cst_60 [1] : vector<9x32xf32> to vector<9xf32>
    %150 = vector.shape_cast %149 : vector<9xf32> to vector<9x1xf32>
    %cst_61 = arith.constant 3.200000e+01 : f32
    %151 = vector.broadcast %cst_61 : f32 to vector<9x1xf32>
    %152 = arith.divf %150, %151 : vector<9x1xf32>
    %cst_62 = arith.constant 9.99999974E-6 : f32
    %153 = vector.broadcast %cst_62 : f32 to vector<9x1xf32>
    %154 = arith.addf %152, %153 : vector<9x1xf32>
    %155 = math.rsqrt %154 : vector<9x1xf32>
    %156 = vector.broadcast %155 : vector<9x1xf32> to vector<9x32xf32>
    %157 = arith.mulf %147, %156 : vector<9x32xf32>
    %158 = vector.broadcast %140 : vector<1x32xf32> to vector<9x32xf32>
    %159 = arith.mulf %157, %158 : vector<9x32xf32>
    %160 = vector.broadcast %141 : vector<1x32xf32> to vector<9x32xf32>
    %161 = arith.addf %159, %160 : vector<9x32xf32>
    %c0_63 = arith.constant 0 : index
    %c0_64 = arith.constant 0 : index
    %162 = vector.load %arg10[%c0_63, %c0_64] : memref<32x64xf32, #tpu.memory_space<vmem>>, vector<32x64xf32>
    %cst_65 = arith.constant dense<0.000000e+00> : vector<9x64xf32>
    %163 = tpu.matmul %161, %162, %cst_65 {dimension_numbers = #tpu.dot_dimension_numbers<[1], [0], [0], [1], [0, 0, 1, 1], [], []>} : vector<9x32xf32>, vector<32x64xf32>, vector<9x64xf32> -> vector<9x64xf32>
    %c0_66 = arith.constant 0 : index
    %c0_67 = arith.constant 0 : index
    %164 = vector.load %arg11[%c0_66, %c0_67] : memref<1x64xf32, #tpu.memory_space<vmem>>, vector<1x64xf32>
    %165 = vector.broadcast %164 : vector<1x64xf32> to vector<9x64xf32>
    %166 = arith.addf %163, %165 : vector<9x64xf32>
    %cst_68 = arith.constant 5.000000e-01 : f32
    %167 = vector.broadcast %cst_68 : f32 to vector<9x64xf32>
    %168 = arith.mulf %167, %166 : vector<9x64xf32>
    %cst_69 = arith.constant 0.707106769 : f32
    %169 = vector.broadcast %cst_69 : f32 to vector<9x64xf32>
    %170 = arith.mulf %166, %169 : vector<9x64xf32>
    %171 = math.absf %170 : vector<9x64xf32>
    %cst_70 = arith.constant 0.327591091 : f32
    %172 = vector.broadcast %cst_70 : f32 to vector<9x64xf32>
    %173 = arith.mulf %172, %171 : vector<9x64xf32>
    %cst_71 = arith.constant 1.000000e+00 : f32
    %174 = vector.broadcast %cst_71 : f32 to vector<9x64xf32>
    %175 = arith.addf %174, %173 : vector<9x64xf32>
    %cst_72 = arith.constant 1.000000e+00 : f32
    %176 = vector.broadcast %cst_72 : f32 to vector<9x64xf32>
    %177 = arith.divf %176, %175 : vector<9x64xf32>
    %cst_73 = arith.constant 1.06140542 : f32
    %178 = vector.broadcast %cst_73 : f32 to vector<9x64xf32>
    %179 = arith.mulf %178, %177 : vector<9x64xf32>
    %cst_74 = arith.constant -1.45315206 : f32
    %180 = vector.broadcast %cst_74 : f32 to vector<9x64xf32>
    %181 = arith.addf %179, %180 : vector<9x64xf32>
    %182 = arith.mulf %181, %177 : vector<9x64xf32>
    %cst_75 = arith.constant 1.42141378 : f32
    %183 = vector.broadcast %cst_75 : f32 to vector<9x64xf32>
    %184 = arith.addf %182, %183 : vector<9x64xf32>
    %185 = arith.mulf %184, %177 : vector<9x64xf32>
    %cst_76 = arith.constant -0.284496725 : f32
    %186 = vector.broadcast %cst_76 : f32 to vector<9x64xf32>
    %187 = arith.addf %185, %186 : vector<9x64xf32>
    %188 = arith.mulf %187, %177 : vector<9x64xf32>
    %cst_77 = arith.constant 0.254829586 : f32
    %189 = vector.broadcast %cst_77 : f32 to vector<9x64xf32>
    %190 = arith.addf %188, %189 : vector<9x64xf32>
    %191 = arith.mulf %190, %177 : vector<9x64xf32>
    %192 = arith.mulf %171, %171 : vector<9x64xf32>
    %cst_78 = arith.constant 0.000000e+00 : f32
    %193 = vector.broadcast %cst_78 : f32 to vector<9x64xf32>
    %194 = arith.subf %193, %192 : vector<9x64xf32>
    %195 = math.exp %194 : vector<9x64xf32>
    %196 = arith.mulf %191, %195 : vector<9x64xf32>
    %cst_79 = arith.constant 1.000000e+00 : f32
    %197 = vector.broadcast %cst_79 : f32 to vector<9x64xf32>
    %198 = arith.subf %197, %196 : vector<9x64xf32>
    %cst_80 = arith.constant 0.000000e+00 : f32
    %199 = vector.broadcast %cst_80 : f32 to vector<9x64xf32>
    %200 = arith.cmpf oge, %170, %199 : vector<9x64xf32>
    %cst_81 = arith.constant 0.000000e+00 : f32
    %201 = vector.broadcast %cst_81 : f32 to vector<9x64xf32>
    %202 = arith.subf %201, %198 : vector<9x64xf32>
    %203 = arith.select %200, %198, %202 : vector<9x64xi1>, vector<9x64xf32>
    %cst_82 = arith.constant 1.000000e+00 : f32
    %204 = vector.broadcast %cst_82 : f32 to vector<9x64xf32>
    %205 = arith.addf %204, %203 : vector<9x64xf32>
    %206 = arith.mulf %168, %205 : vector<9x64xf32>
    %c0_83 = arith.constant 0 : index
    %c0_84 = arith.constant 0 : index
    %207 = vector.load %arg12[%c0_83, %c0_84] : memref<64x32xf32, #tpu.memory_space<vmem>>, vector<64x32xf32>
    %cst_85 = arith.constant dense<0.000000e+00> : vector<9x32xf32>
    %208 = tpu.matmul %206, %207, %cst_85 {dimension_numbers = #tpu.dot_dimension_numbers<[1], [0], [0], [1], [0, 0, 1, 1], [], []>} : vector<9x64xf32>, vector<64x32xf32>, vector<9x32xf32> -> vector<9x32xf32>
    %209 = arith.addf %139, %208 : vector<9x32xf32>
    %c0_86 = arith.constant 0 : index
    %c0_87 = arith.constant 0 : index
    %210 = vector.load %arg13[%c0_86, %c0_87] : memref<1x32xf32, #tpu.memory_space<vmem>>, vector<1x32xf32>
    %211 = vector.broadcast %210 : vector<1x32xf32> to vector<9x32xf32>
    %212 = arith.addf %209, %211 : vector<9x32xf32>
    %c0_88 = arith.constant 0 : index
    %c0_89 = arith.constant 0 : index
    %c0_90 = arith.constant 0 : index
    %213 = vector.load %arg14[%c0_88, %c0_89, %c0_90] : memref<1x9x32xf32, #tpu.memory_space<vmem>>, vector<1x9x32xf32>
    %214 = vector.shape_cast %213 : vector<1x9x32xf32> to vector<9x32xf32>
    %215 = vector.shape_cast %212 : vector<9x32xf32> to vector<1x9x32xf32>
    tpu.vector_store %arg14[%c0_88, %c0_89, %c0_90], %215 {strides = array<i32>} : memref<1x9x32xf32, #tpu.memory_space<vmem>>, vector<1x9x32xf32>,
    return
  }
  func.func @transform_0(%arg0: i32) -> (i32, i32, i32) {
    %c0_i32 = arith.constant 0 : i32
    %c0_i32_0 = arith.constant 0 : i32
    %c0_i32_1 = arith.constant 0 : i32
    return %arg0, %c0_i32, %c0_i32_0 : i32, i32, i32
  }
  func.func @transform_1(%arg0: i32) -> (i32, i32) {
    %c0_i32 = arith.constant 0 : i32
    %c0_i32_0 = arith.constant 0 : i32
    %c0_i32_1 = arith.constant 0 : i32
    return %c0_i32, %c0_i32_0 : i32, i32
  }
  func.func @transform_2(%arg0: i32) -> (i32, i32) {
    %c0_i32 = arith.constant 0 : i32
    %c0_i32_0 = arith.constant 0 : i32
    %c0_i32_1 = arith.constant 0 : i32
    return %c0_i32, %c0_i32_0 : i32, i32
  }
  func.func @transform_3(%arg0: i32) -> (i32, i32) {
    %c0_i32 = arith.constant 0 : i32
    %c0_i32_0 = arith.constant 0 : i32
    %c0_i32_1 = arith.constant 0 : i32
    return %c0_i32, %c0_i32_0 : i32, i32
  }
  func.func @transform_4(%arg0: i32) -> (i32, i32) {
    %c0_i32 = arith.constant 0 : i32
    %c0_i32_0 = arith.constant 0 : i32
    %c0_i32_1 = arith.constant 0 : i32
    return %c0_i32, %c0_i32_0 : i32, i32
  }
  func.func @transform_5(%arg0: i32) -> (i32, i32) {
    %c0_i32 = arith.constant 0 : i32
    %c0_i32_0 = arith.constant 0 : i32
    %c0_i32_1 = arith.constant 0 : i32
    return %c0_i32, %c0_i32_0 : i32, i32
  }
  func.func @transform_6(%arg0: i32) -> (i32, i32) {
    %c0_i32 = arith.constant 0 : i32
    %c0_i32_0 = arith.constant 0 : i32
    %c0_i32_1 = arith.constant 0 : i32
    return %c0_i32, %c0_i32_0 : i32, i32
  }
  func.func @transform_7(%arg0: i32) -> (i32, i32) {
    %c0_i32 = arith.constant 0 : i32
    %c0_i32_0 = arith.constant 0 : i32
    %c0_i32_1 = arith.constant 0 : i32
    return %c0_i32, %c0_i32_0 : i32, i32
  }
  func.func @transform_8(%arg0: i32) -> (i32, i32) {
    %c0_i32 = arith.constant 0 : i32
    %c0_i32_0 = arith.constant 0 : i32
    %c0_i32_1 = arith.constant 0 : i32
    return %c0_i32, %c0_i32_0 : i32, i32
  }
  func.func @transform_9(%arg0: i32) -> (i32, i32) {
    %c0_i32 = arith.constant 0 : i32
    %c0_i32_0 = arith.constant 0 : i32
    %c0_i32_1 = arith.constant 0 : i32
    return %c0_i32, %c0_i32_0 : i32, i32
  }
  func.func @transform_10(%arg0: i32) -> (i32, i32) {
    %c0_i32 = arith.constant 0 : i32
    %c0_i32_0 = arith.constant 0 : i32
    %c0_i32_1 = arith.constant 0 : i32
    return %c0_i32, %c0_i32_0 : i32, i32
  }
  func.func @transform_11(%arg0: i32) -> (i32, i32) {
    %c0_i32 = arith.constant 0 : i32
    %c0_i32_0 = arith.constant 0 : i32
    %c0_i32_1 = arith.constant 0 : i32
    return %c0_i32, %c0_i32_0 : i32, i32
  }
  func.func @transform_12(%arg0: i32) -> (i32, i32) {
    %c0_i32 = arith.constant 0 : i32
    %c0_i32_0 = arith.constant 0 : i32
    %c0_i32_1 = arith.constant 0 : i32
    return %c0_i32, %c0_i32_0 : i32, i32
  }
  func.func @transform_13(%arg0: i32) -> (i32, i32, i32) {
    %c0_i32 = arith.constant 0 : i32
    %c0_i32_0 = arith.constant 0 : i32
    %c0_i32_1 = arith.constant 0 : i32
    return %arg0, %c0_i32, %c0_i32_0 : i32, i32, i32
  }
}

module attributes {stable_mosaic.version = 11 : i64} {
  func.func @_final_kernel(%arg0: i32, %arg1: memref<1x9x32xf32, #tpu.memory_space<vmem>>, %arg2: memref<1x32xf32, #tpu.memory_space<vmem>>, %arg3: memref<1x32xf32, #tpu.memory_space<vmem>>, %arg4: memref<32x128xf32, #tpu.memory_space<vmem>>, %arg5: memref<1x128xf32, #tpu.memory_space<vmem>>, %arg6: memref<1x9x128xf32, #tpu.memory_space<vmem>>) attributes {dimension_semantics = [#tpu.dimension_semantics<parallel>], iteration_bounds = array<i64: 2>, scalar_prefetch = 0 : i64, scratch_operands = 0 : i64, tpu.core_type = #tpu.core_type<tc>, window_params = [{transform_indices = @transform_0, window_bounds = array<i64: 1, 9, 32>}, {pipeline_mode = #tpu.pipeline_mode<synchronous>, transform_indices = @transform_1, window_bounds = array<i64: 1, 32>}, {pipeline_mode = #tpu.pipeline_mode<synchronous>, transform_indices = @transform_2, window_bounds = array<i64: 1, 32>}, {pipeline_mode = #tpu.pipeline_mode<synchronous>, transform_indices = @transform_3, window_bounds = array<i64: 32, 128>}, {pipeline_mode = #tpu.pipeline_mode<synchronous>, transform_indices = @transform_4, window_bounds = array<i64: 1, 128>}, {transform_indices = @transform_5, window_bounds = array<i64: 1, 9, 128>}]} {
    %c0 = arith.constant 0 : index
    %c0_0 = arith.constant 0 : index
    %c0_1 = arith.constant 0 : index
    %0 = vector.load %arg1[%c0, %c0_0, %c0_1] : memref<1x9x32xf32, #tpu.memory_space<vmem>>, vector<1x9x32xf32>
    %1 = vector.shape_cast %0 : vector<1x9x32xf32> to vector<9x32xf32>
    %c0_2 = arith.constant 0 : index
    %c0_3 = arith.constant 0 : index
    %2 = vector.load %arg2[%c0_2, %c0_3] : memref<1x32xf32, #tpu.memory_space<vmem>>, vector<1x32xf32>
    %c0_4 = arith.constant 0 : index
    %c0_5 = arith.constant 0 : index
    %3 = vector.load %arg3[%c0_4, %c0_5] : memref<1x32xf32, #tpu.memory_space<vmem>>, vector<1x32xf32>
    %cst = arith.constant dense<0.000000e+00> : vector<9xf32>
    %4 = vector.multi_reduction <add>, %1, %cst [1] : vector<9x32xf32> to vector<9xf32>
    %5 = vector.shape_cast %4 : vector<9xf32> to vector<9x1xf32>
    %cst_6 = arith.constant 3.200000e+01 : f32
    %6 = vector.broadcast %cst_6 : f32 to vector<9x1xf32>
    %7 = arith.divf %5, %6 : vector<9x1xf32>
    %8 = vector.broadcast %7 : vector<9x1xf32> to vector<9x32xf32>
    %9 = arith.subf %1, %8 : vector<9x32xf32>
    %10 = arith.mulf %9, %9 : vector<9x32xf32>
    %cst_7 = arith.constant dense<0.000000e+00> : vector<9xf32>
    %11 = vector.multi_reduction <add>, %10, %cst_7 [1] : vector<9x32xf32> to vector<9xf32>
    %12 = vector.shape_cast %11 : vector<9xf32> to vector<9x1xf32>
    %cst_8 = arith.constant 3.200000e+01 : f32
    %13 = vector.broadcast %cst_8 : f32 to vector<9x1xf32>
    %14 = arith.divf %12, %13 : vector<9x1xf32>
    %cst_9 = arith.constant 9.99999974E-6 : f32
    %15 = vector.broadcast %cst_9 : f32 to vector<9x1xf32>
    %16 = arith.addf %14, %15 : vector<9x1xf32>
    %17 = math.rsqrt %16 : vector<9x1xf32>
    %18 = vector.broadcast %17 : vector<9x1xf32> to vector<9x32xf32>
    %19 = arith.mulf %9, %18 : vector<9x32xf32>
    %20 = vector.broadcast %2 : vector<1x32xf32> to vector<9x32xf32>
    %21 = arith.mulf %19, %20 : vector<9x32xf32>
    %22 = vector.broadcast %3 : vector<1x32xf32> to vector<9x32xf32>
    %23 = arith.addf %21, %22 : vector<9x32xf32>
    %c0_10 = arith.constant 0 : index
    %c0_11 = arith.constant 0 : index
    %24 = vector.load %arg4[%c0_10, %c0_11] : memref<32x128xf32, #tpu.memory_space<vmem>>, vector<32x128xf32>
    %cst_12 = arith.constant dense<0.000000e+00> : vector<9x128xf32>
    %25 = tpu.matmul %23, %24, %cst_12 {dimension_numbers = #tpu.dot_dimension_numbers<[1], [0], [0], [1], [0, 0, 1, 1], [], []>} : vector<9x32xf32>, vector<32x128xf32>, vector<9x128xf32> -> vector<9x128xf32>
    %c0_13 = arith.constant 0 : index
    %c0_14 = arith.constant 0 : index
    %26 = vector.load %arg5[%c0_13, %c0_14] : memref<1x128xf32, #tpu.memory_space<vmem>>, vector<1x128xf32>
    %27 = vector.broadcast %26 : vector<1x128xf32> to vector<9x128xf32>
    %28 = arith.addf %25, %27 : vector<9x128xf32>
    %c0_15 = arith.constant 0 : index
    %c0_16 = arith.constant 0 : index
    %c0_17 = arith.constant 0 : index
    %29 = vector.load %arg6[%c0_15, %c0_16, %c0_17] : memref<1x9x128xf32, #tpu.memory_space<vmem>>, vector<1x9x128xf32>
    %30 = vector.shape_cast %29 : vector<1x9x128xf32> to vector<9x128xf32>
    %31 = vector.shape_cast %28 : vector<9x128xf32> to vector<1x9x128xf32>
    tpu.vector_store %arg6[%c0_15, %c0_16, %c0_17], %31 {strides = array<i32>} : memref<1x9x128xf32, #tpu.memory_space<vmem>>, vector<1x9x128xf32>,
    return
  }
  func.func @transform_0(%arg0: i32) -> (i32, i32, i32) {
    %c0_i32 = arith.constant 0 : i32
    %c0_i32_0 = arith.constant 0 : i32
    %c0_i32_1 = arith.constant 0 : i32
    return %arg0, %c0_i32, %c0_i32_0 : i32, i32, i32
  }
  func.func @transform_1(%arg0: i32) -> (i32, i32) {
    %c0_i32 = arith.constant 0 : i32
    %c0_i32_0 = arith.constant 0 : i32
    %c0_i32_1 = arith.constant 0 : i32
    return %c0_i32, %c0_i32_0 : i32, i32
  }
  func.func @transform_2(%arg0: i32) -> (i32, i32) {
    %c0_i32 = arith.constant 0 : i32
    %c0_i32_0 = arith.constant 0 : i32
    %c0_i32_1 = arith.constant 0 : i32
    return %c0_i32, %c0_i32_0 : i32, i32
  }
  func.func @transform_3(%arg0: i32) -> (i32, i32) {
    %c0_i32 = arith.constant 0 : i32
    %c0_i32_0 = arith.constant 0 : i32
    %c0_i32_1 = arith.constant 0 : i32
    return %c0_i32, %c0_i32_0 : i32, i32
  }
  func.func @transform_4(%arg0: i32) -> (i32, i32) {
    %c0_i32 = arith.constant 0 : i32
    %c0_i32_0 = arith.constant 0 : i32
    %c0_i32_1 = arith.constant 0 : i32
    return %c0_i32, %c0_i32_0 : i32, i32
  }
  func.func @transform_5(%arg0: i32) -> (i32, i32, i32) {
    %c0_i32 = arith.constant 0 : i32
    %c0_i32_0 = arith.constant 0 : i32
    %c0_i32_1 = arith.constant 0 : i32
    return %arg0, %c0_i32, %c0_i32_0 : i32, i32, i32
  }
}

</mosaic_0001>

<bundles_post_ra>
// kernel: audio_predictor_forward.7
= control target key start
LH: loop header
LB: loop body
LE: loop exit
PB: predicated region body
PF: predicated region fallthrough
CT: control target
= control target key end

     0   :  { %s516_s18 = smov 0   ;;  %s565_s0 = inlined_call_operand.vmem [shape: f32[2,9,32], index: 0, kind: input, shape index: {}]   ;;  %s566_s1 = inlined_call_operand.vmem [shape: f32[1,32], index: 1, kind: input, shape index: {}]   ;;  %s567_s2 = inlined_call_operand.vmem [shape: f32[1,32], index: 2, kind: input, shape index: {}]   ;;  %s568_s3 = inlined_call_operand.vmem [shape: f32[32,128], index: 3, kind: input, shape index: {}]   ;;  %s569_s4 = inlined_call_operand.vmem [shape: f32[1,128], index: 4, kind: input, shape index: {}]   ;;  %s570_s5 = inlined_call_operand.vmem [shape: f32[2,9,128], index: 5, kind: output, shape index: {}]  }
   0x1 LB: > { %s423_s19 = sadd.s32 4294967295, %s484_s18   ;;  %p427_p0 = scmp.ge.s32.totalorder %s484_s18, 1  ;;  %s484_s18 = sphi %s516_s18, %s15_s18  }
   0x2   : > { %p187_p1 = scmp.lt.s32.totalorder %s484_s18, 3 }
   0x4   : > { %p188_p2 = pnand %p427_p0, %p187_p1 }
   0x5   : > { %p215_p3 = scmp.lt.s32.totalorder (!%p188_p2), %s423_s19, 1  ;;  %vm229_vm0 = vcmask (!%p188_p2), 261120   ;;  %vm233_vm1 = vcmask (!%p188_p2), 253952   ;;  %v274_v14 = vld [vmem:[%s568_s3] sm:$0xff] (!%p188_p2)  ;;  %v275_v15 = vld [vmem:[%s568_s3 + $0x8] sm:$0xff] (!%p188_p2)  ;;  %v276_v16 = vld [vmem:[%s568_s3 + $0x10] sm:$0xff] (!%p188_p2) }
   0x6   : > { %191 = sbr.rel (%p188_p2) target bundleno = 550 (0x226), region = 40  ;;  %v458_v17 = vpack.c.bf16 (!%p188_p2), %v275_v15, %v274_v14  ;;  %v277_v18 = vld [vmem:[%s568_s3 + $0x18] sm:$0xff] (!%p188_p2)  ;;  %v432_v27 = vld [vmem:[%s566_s1] ss:$0 sm:$0xff] (!%p188_p2) }
   0x7   : > { %v462_v19 = vpack.c.bf16 (!%p188_p2), %v277_v18, %v276_v16  ;;  %v433_v29 = vld [vmem:[%s567_s2] ss:$0 sm:$0xff] (!%p188_p2) }
   0x8   : > { %459 = vmatprep.subr.bf16.mxu0 (!%p188_p2), %v458_v17  ;;  %v434_v36 = vld [vmem:[%s569_s4] ss:$0 sm:$0xff] (!%p188_p2) }
   0x9   : > { %461 = vmatpush3.bf16.msra.mxu0 (!%p188_p2), %v458_v17 }
   0xa   : > { %463 = vmatprep.subr.bf16.mxu0 (!%p188_p2), %v462_v19 }
   0xd   : > { %s572_s19 = smov (!%p215_p3, %s423_s19), 1  ;;  %465 = vmatpush3.bf16.msra.mxu0 %v462_v19 }
   0xe   : > { %s439_s20 = sshll.u32 %s572_s19, 4 }
   0xf   : > { %s219_s23 = scalar_lea.vmem %s565_s0, %s439_s20  ;;  %s224_s15 = scalar_lea.vmem %s570_s5, %s439_s20 }
  0x10   : > { %v225_v0 = vld [vmem:[%s219_s23] sm:$0xff]  ;;  %v226_v1 = vld [vmem:[%s219_s23 + $0x8] sm:$0x1] }
  0x11   : > { %v230_v2 = vsel %vm229_vm0, %v225_v0, 0.0  ;;  %v234_v3 = vsel %vm233_vm1, %v226_v1, 0.0 }
  0x12   : > { %231 = vadd.xlane.f32.xlu0 %v230_v2 }
  0x16   : > { %235 = vadd.xlane.f32.xlu0 %v234_v3 }
  0x9f   : > { %v232_v4 = vpop.xlane.xlu0 %231 }
  0xa0   : > { %v238_v5 = vmul.f32 0.03125, %v232_v4 }
  0xa2   : > { %v240_v6 = vsub.f32 %v225_v0, %v238_v5 }
  0xa3   : > { %v236_v7 = vpop.xlane.xlu0 %235 }
  0xa4   : > { %v239_v8 = vmul.f32 0.03125, %v236_v7  ;;  %v242_v9 = vmul.f32 %v240_v6, %v240_v6 }
  0xa6   : > { %v241_v10 = vsub.f32 %v226_v1, %v239_v8  ;;  %v244_v11 = vsel %vm229_vm0, %v242_v9, 0.0 }
  0xa7   : > { %245 = vadd.xlane.f32.xlu1 %v244_v11 }
  0xa8   : > { %v243_v12 = vmul.f32 %v241_v10, %v241_v10 }
  0xaa   : > { %v247_v13 = vsel %vm233_vm1, %v243_v12, 0.0 }
  0xab   : > { %248 = vadd.xlane.f32.xlu1 %v247_v13 }
 0x134   : > { %v246_v20 = vpop.xlane.xlu1 %245 }
 0x135   : > { %v250_v21 = vmul.f32 0.03125, %v246_v20 }
 0x137   : > { %v252_v22 = vadd.f32 1e-05, %v250_v21 }
 0x138   : > { %v249_v23 = vpop.xlane.xlu1 %248 }
 0x139   : > { %474 = vrsqrt.f32 %v252_v22  ;;  %v251_v24 = vmul.f32 0.03125, %v249_v23 }
 0x13b   : > { %v253_v25 = vadd.f32 1e-05, %v251_v24 }
 0x13d   : > { %476 = vrsqrt.f32 %v253_v25 }
 0x143   : > { %v475_v26 = vpop.eup %474 }
 0x144   : > { %v256_v28 = vmul.f32 %v475_v26, %v240_v6 }
 0x146   : > { %v264_v30 = vmul.f32 %v432_v27, %v256_v28 }
 0x147   : > { %v477_v31 = vpop.eup %476 }
 0x148   : > { %v257_v32 = vmul.f32 %v477_v31, %v241_v10  ;;  %v272_v33 = vadd.f32 %v433_v29, %v264_v30 }
 0x14a   : > { %v265_v34 = vmul.f32 %v432_v27, %v257_v32  ;;  %455 = vmatprep.mubr.msk.f32.mxu0 %vm229_vm0, %v272_v33 }
 0x14c   : > { %v273_v35 = vadd.f32 %v433_v29, %v265_v34 }
 0x14e   : > { %456 = vmatmul.mubr.msk.f32.vlgmr.msra.gmra.mrb[0].mxu0 %vm229_vm0, %v273_v35 }
 0x221   : > { %v457_v37 = vpop.f32.mrb[0].mxu0 }
 0x222   : > { %v363_v38 = vadd.f32 %v457_v37, %v434_v36  ;;  %v357_v39 = vpop.f32.mrb[1].mxu0 }
 0x223   : > { %v358_v40 = vadd.f32 %v434_v36, %v357_v39 }
 0x224   : > { %367 = vst [vmem:[%s224_s15 + $0x8] sm:$0x1] %v363_v38 }
 0x225   : > { %366 = vst [vmem:[%s224_s15] sm:$0xff] %v358_v40 }
 0x226 PF: > { %s15_s18 = sadd.s32 1, %s484_s18  }
 0x227   : > { %p12_p4 = scmp.ge.s32.totalorder %s15_s18, 4  }
 0x229   :  { %14 = sbr.rel (!%p12_p4) target bundleno = 1 (0x1), region = 70 }

// kernel: audio_predictor_forward.4
= control target key start
LH: loop header
LB: loop body
LE: loop exit
PB: predicated region body
PF: predicated region fallthrough
CT: control target
= control target key end

     0   :  { %s1414_s27 = smov 0   ;;  %s1782_s0 = inlined_call_operand.vmem [shape: f32[2,8,32], index: 0, kind: input, shape index: {}]   ;;  %s1783_s1 = inlined_call_operand.vmem [shape: f32[2,9,32], index: 1, kind: input, shape index: {}]   ;;  %s1784_s2 = inlined_call_operand.vmem [shape: f32[32,32], index: 2, kind: input, shape index: {}]   ;;  %s1785_s3 = inlined_call_operand.vmem [shape: f32[1,32], index: 3, kind: input, shape index: {}]   ;;  %s1786_s4 = inlined_call_operand.vmem [shape: f32[9,8], index: 4, kind: input, shape index: {}]   ;;  %s1787_s5 = inlined_call_operand.vmem [shape: f32[39,9], index: 5, kind: input, shape index: {}]   ;;  %s1788_s6 = inlined_call_operand.vmem [shape: f32[31,32], index: 6, kind: input, shape index: {}]   ;;  %s1789_s7 = inlined_call_operand.vmem [shape: f32[1,32], index: 7, kind: input, shape index: {}]   ;;  %s1790_s8 = inlined_call_operand.vmem [shape: f32[2,9,32], index: 8, kind: output, shape index: {}]  }
   0x1 LB: > { %s1219_s28 = sadd.s32 4294967295, %s1363_s27   ;;  %p1223_p0 = scmp.ge.s32.totalorder %s1363_s27, 1  ;;  %s1363_s27 = sphi %s1414_s27, %s18_s27  }
   0x2   : > { %p271_p1 = scmp.lt.s32.totalorder %s1363_s27, 3 }
   0x4   : > { %p272_p2 = pnand %p1223_p0, %p271_p1 }
   0x5   : > { %v324_v0 = vld [vmem:[%s1784_s2] sm:$0xff] (!%p272_p2)  ;;  %v325_v1 = vld [vmem:[%s1784_s2 + $0x8] sm:$0xff] (!%p272_p2)  ;;  %v326_v2 = vld [vmem:[%s1784_s2 + $0x10] sm:$0xff] (!%p272_p2)  ;;  %v1365_v3 = vmov (!%p272_p2), 0.0|0.0   ;;  %vm1366_vm0 = vmmov (!%p272_p2), 0   ;;  %v1367_v6 = vmov (!%p272_p2), 0.0  }
   0x6   : > { %275 = sbr.rel (%p272_p2) target bundleno = 787 (0x313), region = 52  ;;  %1325 = vmatprep.subr.bf16.mxu0 (!%p272_p2), %v1365_v3  ;;  %v1326_v4 = vpack.c.bf16 (!%p272_p2), %v325_v1, %v324_v0  ;;  %v327_v5 = vld [vmem:[%s1784_s2 + $0x18] sm:$0xff] (!%p272_p2)  ;;  %1298 = vmatprep.mubr.msk.f32.mxu0 (!%p272_p2), %vm1366_vm0, %v1367_v6  ;;  %p309_p3 = scmp.lt.s32.totalorder (!%p272_p2), %s1219_s28, 1  ;;  %vm335_vm1 = vcmask (!%p272_p2), 261120   ;;  %v409_v9 = vld [vmem:[%s1786_s4] sm:$0xff] (!%p272_p2)  ;;  %vm413_vm2 = vcmask (!%p272_p2), 64512  }
   0x7   : > { %1335 = vmatprep.subr.bf16.mxu1 (!%p272_p2), %v1365_v3  ;;  %1313 = vmatprep.mubr.msk.f32.mxu1 (!%p272_p2), %vm1366_vm0, %v1367_v6  ;;  %v1329_v7 = vpack.c.bf16 (!%p272_p2), %v327_v5, %v326_v2  ;;  %v1229_v10 = vld [vmem:[%s1785_s3] ss:$0 sm:$0xff] (!%p272_p2)  ;;  %v410_v14 = vld [vmem:[%s1786_s4 + $0x8] sm:$0x1] (!%p272_p2)  ;;  %vm516_vm3 = vcmask (!%p272_p2), 1040384   ;;  %vm1368_vm4 = vmmov (!%p272_p2), 1  }
   0x8   : > { %1327 = vmatpush3.bf16.msra.mxu0 (!%p272_p2), %v1326_v4  ;;  %vm1333_vm5 = vmpackc.low (!%p272_p2), %vm516_vm3, %vm1368_vm4  ;;  %v495_v22 = vld [vmem:[%s1787_s5] sm:$0xff] (!%p272_p2)  ;;  %vm500_vm6 = vcmask (!%p272_p2), 72704   ;;  %v496_v23 = vld [vmem:[%s1787_s5 + $0x8] sm:$0xff] (!%p272_p2)  ;;  %vm628_vm7 = vcmask (!%p272_p2), 1046528   ;;  %vm645_vm8 = vcmask (!%p272_p2), 1045504   ;;  %vm662_vm9 = vcmask (!%p272_p2), 1044480  }
   0x9   : > { %1328 = vmatprep.subr.bf16.mxu0 (!%p272_p2), %v1365_v3  ;;  %v497_v24 = vld [vmem:[%s1787_s5 + $0x10] sm:$0xff] (!%p272_p2)  ;;  %v498_v25 = vld [vmem:[%s1787_s5 + $0x18] sm:$0xff] (!%p272_p2)  ;;  %v499_v26 = vld [vmem:[%s1787_s5 + $0x20] sm:$0x7f] (!%p272_p2)  ;;  %vm679_vm10 = vcmask (!%p272_p2), 1043456   ;;  %vm696_vm11 = vcmask (!%p272_p2), 1042432  }
   0xa   : > { %v1240_v27 = vld [vmem:[%s1788_s6 + $0x1] ss:$0 sm:$0xff] (!%p272_p2)  ;;  %v1241_v28 = vld [vmem:[%s1788_s6 + $0x2] ss:$0 sm:$0xff] (!%p272_p2)  ;;  %v1239_v29 = vld [vmem:[%s1788_s6] ss:$0 sm:$0xff] (!%p272_p2) }
   0xb   : > { %v1242_v30 = vld [vmem:[%s1788_s6 + $0x3] ss:$0 sm:$0xff] (!%p272_p2)  ;;  %v1243_v31 = vld [vmem:[%s1788_s6 + $0x4] ss:$0 sm:$0xff] (!%p272_p2)  ;;  %v1244_v32 = vld [vmem:[%s1788_s6 + $0x5] ss:$0 sm:$0xff] (!%p272_p2) }
   0xc   : > { %1330 = vmatpush3.bf16.msra.mxu0 (!%p272_p2), %v1329_v7  ;;  %v1245_v33 = vld [vmem:[%s1788_s6 + $0x6] ss:$0 sm:$0xff] (!%p272_p2)  ;;  %v1246_v34 = vld [vmem:[%s1788_s6 + $0x7] ss:$0 sm:$0xff] (!%p272_p2)  ;;  %vm713_vm12 = vcmask (!%p272_p2), 1041408   ;;  %vm1150_vm15 = vcmask (!%p272_p2), 253952  }
   0xd   : > { %s1792_s28 = smov (!%p309_p3, %s1219_s28), 1  ;;  %v1527_v4 = vld [vmem:[%s1788_s6 + $0x8] ss:$0 sm:$0xff] }
   0xe   : > { %s1224_s15 = sshll.u32 %s1792_s28, 3  ;;  %s1273_s25 = sshll.u32 %s1792_s28, 4 }
   0xf   : > { %s312_s18 = scalar_lea.vmem %s1782_s0, %s1224_s15  ;;  %s317_s30 = scalar_lea.vmem %s1783_s1, %s1273_s25 }
  0x10   : > { %v323_v8 = vld [vmem:[%s312_s18] sm:$0xff]  ;;  %v412_v15 = vld [vmem:[%s317_s30 + $0x8] sm:$0x1]  ;;  %s322_s9 = scalar_lea.vmem %s1790_s8, %s1273_s25 }
  0x11   : > { %1299 = vmatmul.mubr.msk.f32.vlgmr.msra.gmra.mrb[0].mxu0 %vm335_vm1, %v323_v8  ;;  %v411_v16 = vld [vmem:[%s317_s30] sm:$0xff] }
  0x12   : > { %1303 = vmatprep.mubr.msk.f32.mxu0 %vm413_vm2, %v409_v9 }
  0xe4   : > { %v405_v11 = vpop.f32.mrb[0].mxu0 }
  0xe5   : > { %v406_v12 = vadd.f32 %v1229_v10, %v405_v11  ;;  %v1300_v13 = vpop.f32.mrb[1].mxu0  ;;  %v1248_v10 = vld [vmem:[%s1788_s6 + $0x9] ss:$0 sm:$0xff] }
  0xe7   : > { %1301 = vmatprep.subr.mxu0 %v406_v12 }
  0xe8   : > { %1302 = vmatpush3.msra.mxu0 %v406_v12 }
  0xe9   : > { %1304 = vmatmul.mubr.msk.f32.vlgmr.msra.gmra.mrb[2].mxu0 %vm413_vm2, %v410_v14  ;;  %1331 = vmatprep.subr.bf16.mxu0 %v1365_v3 }
  0xea   : > { %1310 = vmatprep.mubr.msk.f32.mxu0 %vm1366_vm0, %v1367_v6 }
 0x1bc   : > { %v1305_v17 = vpop.f32.mrb[2].mxu0 }
 0x1bd   : > { %v1459_v18 = vadd.f32 %v1305_v17, %v412_v15  ;;  %v486_v19 = vpop.f32.mrb[3].mxu0  ;;  %v1250_v17 = vld [vmem:[%s1788_s6 + $0xb] ss:$0 sm:$0xff] }
 0x1be   : > { %v1461_v20 = vadd.f32 %v486_v19, %v411_v16  ;;  %v1249_v16 = vld [vmem:[%s1788_s6 + $0xa] ss:$0 sm:$0xff] }
 0x1c0   : > { %v1332_v21 = vpack.c.bf16 %v1459_v18, %v1461_v20 }
 0x1c2   : > { %1334 = vmatpush3.bf16.msk.msra.mxu0 %vm1333_vm5, %v1332_v21  ;;  %1336 = vmatpush3.bf16.msk.msra.mxu1 %vm1333_vm5, %v1332_v21 }
 0x1c5   : > { %1311 = vmatmul.mubr.msk.f32.vlgmr.msra.gmra.mrb[4].mxu0 %vm500_vm6, %v495_v22  ;;  %1314 = vmatmul.mubr.msk.f32.vlgmr.msra.gmra.mrb[0].mxu1 %vm500_vm6, %v496_v23 }
 0x1c6   : > { %1316 = vmatprep.mubr.msk.f32.mxu1 %vm1366_vm0, %v1367_v6 }
 0x1c9   : > { %1317 = vmatmul.mubr.msk.f32.gmra.mrb[2].mxu1 %vm500_vm6, %v497_v24 }
 0x1ca   : > { %1319 = vmatprep.mubr.msk.f32.mxu1 %vm1366_vm0, %v1367_v6 }
 0x1cd   : > { %1320 = vmatmul.mubr.msk.f32.gmra.mrb[4].mxu1 %vm500_vm6, %v498_v25 }
 0x1ce   : > { %1322 = vmatprep.mubr.msk.f32.mxu1 %vm1366_vm0, %v1367_v6 }
 0x1d1   : > { %1323 = vmatmul.mubr.msk.f32.gmra.mrb[6].mxu1 %vm500_vm6, %v499_v26 }
 0x298   : > { %v586_v35 = vpop.f32.mrb[4].mxu0  ;;  %v1508_v36 = vpop.f32.mrb[0].mxu1 }
 0x299   : > { %v624_v37 = vmul.f32 %v1240_v27, %v586_v35  ;;  %v641_v38 = vmul.f32 %v1241_v28, %v586_v35  ;;  %v658_v39 = vmul.f32 %v1242_v30, %v586_v35  ;;  %v1312_v40 = vpop.f32.mrb[5].mxu0  ;;  %v1315_v41 = vpop.f32.mrb[1].mxu1  ;;  %v675_v42 = vmul.f32 %v1243_v31, %v586_v35 }
 0x29a   : > { %v692_v43 = vmul.f32 %v1244_v32, %v586_v35  ;;  %v709_v44 = vmul.f32 %v1245_v33, %v586_v35  ;;  %v726_v45 = vmul.f32 %v1246_v34, %v586_v35  ;;  %v615_v46 = vmul.f32 %v1239_v29, %v586_v35 }
 0x29b   : > { %v629_v47 = vrot.slane %v624_v37, 1  ;;  %v646_v48 = vrot.slane %v641_v38, 2  ;;  %v663_v49 = vrot.slane %v658_v39, 3  ;;  %v680_v50 = vrot.slane %v675_v42, 4  ;;  %v1252_v39 = vld [vmem:[%s1788_s6 + $0xd] ss:$0 sm:$0xff] }
 0x29c   : > { %v697_v51 = vrot.slane %v692_v43, 5  ;;  %v714_v52 = vrot.slane %v709_v44, 6  ;;  %v1510_v53 = vpop.f32.mrb[2].mxu1  ;;  %v616_v54 = vmul.f32 %v1239_v29, %v1508_v36  ;;  %v625_v56 = vmul.f32 %v1240_v27, %v1508_v36 }
 0x29d   : > { %v1318_v55 = vpop.f32.mrb[3].mxu1  ;;  %v642_v57 = vmul.f32 %v1241_v28, %v1508_v36  ;;  %v659_v58 = vmul.f32 %v1242_v30, %v1508_v36  ;;  %v676_v59 = vmul.f32 %v1243_v31, %v1508_v36  ;;  %v730_v60 = vrot.slane %v726_v45, 7 }
 0x29e   : > { %v693_v61 = vmul.f32 %v1244_v32, %v1508_v36  ;;  %v1519_v62 = vmul.f32 %v1245_v33, %v1508_v36  ;;  %v1522_v63 = vmul.f32 %v1246_v34, %v1508_v36  ;;  %v630_v0 = vrot.slane %v625_v56, 1  ;;  %v1251_v33 = vld [vmem:[%s1788_s6 + $0xc] ss:$0 sm:$0xff]  ;;  %v1254_v55 = vld [vmem:[%s1788_s6 + $0xf] ss:$0 sm:$0xff] }
 0x29f   : > { %v647_v1 = vrot.slane %v642_v57, 2  ;;  %v664_v2 = vrot.slane %v659_v58, 3  ;;  %v681_v3 = vrot.slane %v676_v59, 4  ;;  %v1535_v9 = vmul.f32 %v1527_v4, %v1510_v53 }
 0x2a0   : > { %v1529_v5 = vpop.f32.mrb[4].mxu1  ;;  %v698_v6 = vrot.slane %v693_v61, 5  ;;  %v715_v7 = vrot.slane %v1519_v62, 6  ;;  %v731_v8 = vrot.slane %v1522_v63, 7  ;;  %v631_v12 = vsel %vm628_vm7, %v629_v47, %v630_v0 }
 0x2a1   : > { %v1321_v11 = vpop.f32.mrb[5].mxu1  ;;  %v635_v13 = vadd.f32 %v630_v0, %v616_v54  ;;  %v648_v14 = vsel %vm645_vm8, %v646_v48, %v647_v1  ;;  %v665_v15 = vsel %vm662_vm9, %v663_v49, %v664_v2  ;;  %v634_v19 = vadd.f32 %v631_v12, %v615_v46  ;;  %v1253_v49 = vld [vmem:[%s1788_s6 + $0xe] ss:$0 sm:$0xff]  ;;  %v1256_v12 = vld [vmem:[%s1788_s6 + $0x11] ss:$0 sm:$0xff] }
 0x2a2   : > { %v682_v21 = vsel %vm679_vm10, %v680_v50, %v681_v3  ;;  %v699_v22 = vsel %vm696_vm11, %v697_v51, %v698_v6  ;;  %v716_v23 = vsel %vm713_vm12, %v714_v52, %v715_v7  ;;  %v732_v25 = vsel %vm516_vm3, %v730_v60, %v731_v8 }
 0x2a3   : > { %v652_v24 = vadd.f32 %v647_v1, %v635_v13  ;;  %v751_v26 = vmul.f32 %v1248_v10, %v1508_v36  ;;  %v1555_v27 = vmul.f32 %v1248_v10, %v1510_v53  ;;  %v651_v29 = vadd.f32 %v648_v14, %v634_v19 }
 0x2a4   : > { %v1557_v28 = vpop.f32.mrb[6].mxu1  ;;  %v767_v30 = vmul.f32 %v1249_v16, %v1508_v36  ;;  %v1561_v31 = vmul.f32 %v1249_v16, %v1510_v53  ;;  %v783_v32 = vmul.f32 %v1250_v17, %v1508_v36  ;;  %v1569_v38 = vmul.f32 %v1250_v17, %v1510_v53  ;;  %v1257_v16 = vld [vmem:[%s1788_s6 + $0x12] ss:$0 sm:$0xff] }
 0x2a5   : > { %v669_v34 = vadd.f32 %v664_v2, %v652_v24  ;;  %v755_v35 = vrot.slane %v751_v26, 1  ;;  %v756_v37 = vrot.slane %v1555_v27, 1  ;;  %v1324_v40 = vpop.f32.mrb[7].mxu1  ;;  %v668_v41 = vadd.f32 %v665_v15, %v651_v29 }
 0x2a6   : > { %v771_v42 = vrot.slane %v767_v30, 2  ;;  %v772_v43 = vrot.slane %v1561_v31, 2  ;;  %v787_v44 = vrot.slane %v783_v32, 3  ;;  %v788_v47 = vrot.slane %v1569_v38, 3  ;;  %v1260_v40 = vld [vmem:[%s1788_s6 + $0x15] ss:$0 sm:$0xff] }
 0x2a7   : > { %v686_v45 = vadd.f32 %v681_v3, %v669_v34  ;;  %v757_v46 = vsel %vm628_vm7, %v755_v35, %v756_v37  ;;  %v799_v48 = vmul.f32 %v1251_v33, %v1508_v36  ;;  %v685_v50 = vadd.f32 %v682_v21, %v668_v41 }
 0x2a8   : > { %v773_v51 = vsel %vm645_vm8, %v771_v42, %v772_v43  ;;  %v1583_v52 = vmul.f32 %v1251_v33, %v1510_v53  ;;  %v815_v54 = vmul.f32 %v1252_v39, %v1508_v36  ;;  %v789_v57 = vsel %vm662_vm9, %v787_v44, %v788_v47 }
 0x2a9   : > { %v703_v56 = vadd.f32 %v698_v6, %v686_v45  ;;  %v803_v58 = vrot.slane %v799_v48, 4  ;;  %v1591_v59 = vmul.f32 %v1252_v39, %v1510_v53  ;;  %v702_v60 = vadd.f32 %v699_v22, %v685_v50  ;;  %v1261_v45 = vld [vmem:[%s1788_s6 + $0x16] ss:$0 sm:$0xff] }
 0x2aa   : > { %v804_v61 = vrot.slane %v1583_v52, 4  ;;  %v819_v62 = vrot.slane %v815_v54, 5  ;;  %v831_v63 = vmul.f32 %v1253_v49, %v1508_v36  ;;  %v1597_v2 = vmul.f32 %v1253_v49, %v1510_v53 }
 0x2ab   : > { %v720_v0 = vadd.f32 %v715_v7, %v703_v56  ;;  %v820_v1 = vrot.slane %v1591_v59, 5  ;;  %v847_v3 = vmul.f32 %v1254_v55, %v1508_v36  ;;  %v719_v6 = vadd.f32 %v716_v23, %v702_v60 }
 0x2ac   : > { %v805_v10 = vsel %vm679_vm10, %v803_v58, %v804_v61  ;;  %v1602_v11 = vmul.f32 %v1254_v55, %v1510_v53  ;;  %v835_v14 = vrot.slane %v831_v63, 6  ;;  %v836_v15 = vrot.slane %v1597_v2, 6  ;;  %v1255_v63 = vld [vmem:[%s1788_s6 + $0x10] ss:$0 sm:$0xff] }
 0x2ad   : > { %v736_v13 = vadd.f32 %v731_v8, %v720_v0  ;;  %v821_v7 = vsel %vm696_vm11, %v819_v62, %v820_v1  ;;  %v735_v17 = vadd.f32 %v732_v25, %v719_v6  ;;  %v742_v19 = vmul.f32 %v1527_v4, %v1508_v36  ;;  %v1258_v8 = vld [vmem:[%s1788_s6 + $0x13] ss:$0 sm:$0xff] }
 0x2ae   : > { %v851_v21 = vrot.slane %v847_v3, 7  ;;  %v852_v22 = vrot.slane %v1602_v11, 7  ;;  %v837_v24 = vsel %vm713_vm12, %v835_v14, %v836_v15  ;;  %v872_v26 = vmul.f32 %v1256_v12, %v1510_v53 }
 0x2af   : > { %v745_v23 = vadd.f32 %v1535_v9, %v736_v13  ;;  %v1626_v25 = vmul.f32 %v1256_v12, %v1529_v5  ;;  %v744_v27 = vadd.f32 %v742_v19, %v735_v17  ;;  %v888_v4 = vmul.f32 %v1257_v16, %v1510_v53  ;;  %v1259_v9 = vld [vmem:[%s1788_s6 + $0x14] ss:$0 sm:$0xff] }
 0x2b0   : > { %v1631_v36 = vsel %vm516_vm3, %v851_v21, %v852_v22  ;;  %v1635_v29 = vmul.f32 %v1257_v16, %v1529_v5  ;;  %v876_v31 = vrot.slane %v872_v26, 1  ;;  %v904_v33 = vmul.f32 %v1258_v8, %v1510_v53  ;;  %v1265_v21 = vld [vmem:[%s1788_s6 + $0x1a] ss:$0 sm:$0xff] }
 0x2b1   : > { %v761_v30 = vadd.f32 %v756_v37, %v745_v23  ;;  %v877_v32 = vrot.slane %v1626_v25, 1  ;;  %v760_v34 = vadd.f32 %v757_v46, %v744_v27  ;;  %v892_v35 = vrot.slane %v888_v4, 2 }
 0x2b2   : > { %v893_v38 = vrot.slane %v1635_v29, 2  ;;  %v1644_v39 = vmul.f32 %v1258_v8, %v1529_v5  ;;  %v908_v42 = vrot.slane %v904_v33, 3  ;;  %v920_v44 = vmul.f32 %v1259_v9, %v1510_v53 }
 0x2b3   : > { %v777_v41 = vadd.f32 %v772_v43, %v761_v30  ;;  %v1652_v37 = vsel %vm628_vm7, %v876_v31, %v877_v32  ;;  %v776_v46 = vadd.f32 %v773_v51, %v760_v34  ;;  %v1665_v49 = vmul.f32 %v1259_v9, %v1529_v5  ;;  %v1262_v51 = vld [vmem:[%s1788_s6 + $0x17] ss:$0 sm:$0xff]  ;;  %v1267_v34 = vld [vmem:[%s1788_s6 + $0x1c] ss:$0 sm:$0xff] }
 0x2b4   : > { %v1661_v48 = vsel %vm645_vm8, %v892_v35, %v893_v38  ;;  %v909_v43 = vrot.slane %v1644_v39, 3  ;;  %v924_v52 = vrot.slane %v920_v44, 4  ;;  %v936_v54 = vmul.f32 %v1260_v40, %v1510_v53  ;;  %v1263_v39 = vld [vmem:[%s1788_s6 + $0x18] ss:$0 sm:$0xff] }
 0x2b5   : > { %v793_v50 = vadd.f32 %v788_v47, %v777_v41  ;;  %v1669_v55 = vmul.f32 %v1260_v40, %v1529_v5  ;;  %v792_v56 = vadd.f32 %v789_v57, %v776_v46  ;;  %v925_v60 = vrot.slane %v1665_v49, 4 }
 0x2b6   : > { %v1677_v58 = vsel %vm662_vm9, %v908_v42, %v909_v43  ;;  %v952_v47 = vmul.f32 %v1261_v45, %v1510_v53  ;;  %v940_v0 = vrot.slane %v936_v54, 5  ;;  %v1686_v6 = vmul.f32 %v1261_v45, %v1529_v5  ;;  %v1268_v45 = vld [vmem:[%s1788_s6 + $0x1d] ss:$0 sm:$0xff] }
 0x2b7   : > { %v809_v62 = vadd.f32 %v804_v61, %v793_v50  ;;  %v941_v3 = vrot.slane %v1669_v55, 5  ;;  %v808_v57 = vadd.f32 %v805_v10, %v792_v56  ;;  %v1691_v12 = vsel %vm679_vm10, %v924_v52, %v925_v60  ;;  %v1264_v61 = vld [vmem:[%s1788_s6 + $0x19] ss:$0 sm:$0xff] }
 0x2b8   : > { %v956_v13 = vrot.slane %v952_v47, 6  ;;  %v968_v14 = vmul.f32 %v1262_v51, %v1510_v53  ;;  %v957_v10 = vrot.slane %v1686_v6, 6  ;;  %v1704_v19 = vmul.f32 %v1262_v51, %v1529_v5 }
 0x2b9   : > { %v825_v16 = vadd.f32 %v820_v1, %v809_v62  ;;  %v942_v17 = vsel %vm696_vm11, %v940_v0, %v941_v3  ;;  %v824_v8 = vadd.f32 %v821_v7, %v808_v57  ;;  %v863_v23 = vmul.f32 %v1255_v63, %v1510_v53  ;;  %v1266_v1 = vld [vmem:[%s1788_s6 + $0x1b] ss:$0 sm:$0xff] }
 0x2ba   : > { %v864_v26 = vmul.f32 %v1255_v63, %v1529_v5  ;;  %v972_v59 = vrot.slane %v968_v14, 7  ;;  %v958_v4 = vsel %vm713_vm12, %v956_v13, %v957_v10  ;;  %v973_v9 = vrot.slane %v1704_v19, 7 }
 0x2bb   : > { %v841_v27 = vadd.f32 %v836_v15, %v825_v16  ;;  %v993_v30 = vmul.f32 %v1264_v61, %v1529_v5  ;;  %v840_v31 = vadd.f32 %v837_v24, %v824_v8  ;;  %v994_v7 = vmul.f32 %v1264_v61, %v1557_v28 }
 0x2bc   : > { %v1009_v53 = vmul.f32 %v1265_v21, %v1529_v5  ;;  %v1010_v33 = vmul.f32 %v1265_v21, %v1557_v28  ;;  %v974_v15 = vsel %vm516_vm3, %v972_v59, %v973_v9  ;;  %v1025_v40 = vmul.f32 %v1266_v1, %v1529_v5 }
 0x2bd   : > { %v857_v2 = vadd.f32 %v852_v22, %v841_v27  ;;  %v997_v35 = vrot.slane %v993_v30, 1  ;;  %v856_v24 = vadd.f32 %v1631_v36, %v840_v31  ;;  %v998_v41 = vrot.slane %v994_v7, 1  ;;  %v1269_v22 = vld [vmem:[%s1788_s6 + $0x1e] ss:$0 sm:$0xff] }
 0x2be   : > { %v1013_v42 = vrot.slane %v1009_v53, 2  ;;  %v1014_v44 = vrot.slane %v1010_v33, 2  ;;  %v1026_v50 = vmul.f32 %v1266_v1, %v1557_v28  ;;  %v1029_v52 = vrot.slane %v1025_v40, 3 }
 0x2bf   : > { %v866_v46 = vadd.f32 %v864_v26, %v857_v2  ;;  %v1041_v11 = vmul.f32 %v1267_v34, %v1529_v5  ;;  %v865_v54 = vadd.f32 %v863_v23, %v856_v24  ;;  %v999_v36 = vsel %vm628_vm7, %v997_v35, %v998_v41 }
 0x2c0   : > { %v1015_v51 = vsel %vm645_vm8, %v1013_v42, %v1014_v44  ;;  %v1042_v56 = vmul.f32 %v1267_v34, %v1557_v28  ;;  %v1030_v62 = vrot.slane %v1026_v50, 3  ;;  %v1057_v0 = vmul.f32 %v1268_v45, %v1529_v5 }
 0x2c1   : > { %v882_v47 = vadd.f32 %v877_v32, %v866_v46  ;;  %v1045_v63 = vrot.slane %v1041_v11, 4  ;;  %v881_v6 = vadd.f32 %v1652_v37, %v865_v54  ;;  %v1058_v13 = vmul.f32 %v1268_v45, %v1557_v28 }
 0x2c2   : > { %v1046_v57 = vrot.slane %v1042_v56, 4  ;;  %v1073_v14 = vmul.f32 %v1269_v22, %v1529_v5  ;;  %v1031_v16 = vsel %vm662_vm9, %v1029_v52, %v1030_v62  ;;  %v1061_v19 = vrot.slane %v1057_v0, 5 }
 0x2c3   : > { %v898_v61 = vadd.f32 %v893_v38, %v882_v47  ;;  %v1074_v25 = vmul.f32 %v1269_v22, %v1557_v28  ;;  %v897_v32 = vadd.f32 %v1661_v48, %v881_v6  ;;  %v1062_v8 = vrot.slane %v1058_v13, 5 }
 0x2c4   : > { %v1047_v21 = vsel %vm679_vm10, %v1045_v63, %v1046_v57  ;;  %v1077_v23 = vrot.slane %v1073_v14, 6  ;;  %v984_v49 = vmul.f32 %v1263_v39, %v1529_v5 }
 0x2c5   : > { %v914_v37 = vadd.f32 %v909_v43, %v898_v61  ;;  %v1078_v26 = vrot.slane %v1074_v25, 6  ;;  %v913_v59 = vadd.f32 %v1677_v58, %v897_v32  ;;  %v1063_v29 = vsel %vm696_vm11, %v1061_v19, %v1062_v8 }
 0x2c6   : > { %v985_v58 = vmul.f32 %v1263_v39, %v1557_v28  ;;  %v1270_v28 = vld [vmem:[%s1789_s7] ss:$0 sm:$0xff] }
 0x2c7   : > { %v930_v38 = vadd.f32 %v925_v60, %v914_v37  ;;  %v1079_v1 = vsel %vm713_vm12, %v1077_v23, %v1078_v26  ;;  %v929_v27 = vadd.f32 %v1691_v12, %v913_v59 }
 0x2c9   : > { %v946_v48 = vadd.f32 %v941_v3, %v930_v38  ;;  %v945_v30 = vadd.f32 %v942_v17, %v929_v27 }
 0x2cb   : > { %v962_v43 = vadd.f32 %v957_v10, %v946_v48  ;;  %v961_v31 = vadd.f32 %v958_v4, %v945_v30 }
 0x2cd   : > { %v978_v7 = vadd.f32 %v973_v9, %v962_v43  ;;  %v977_v53 = vadd.f32 %v974_v15, %v961_v31 }
 0x2cf   : > { %v987_v60 = vadd.f32 %v985_v58, %v978_v7  ;;  %v986_v33 = vadd.f32 %v984_v49, %v977_v53 }
 0x2d1   : > { %v1003_v34 = vadd.f32 %v998_v41, %v987_v60  ;;  %v1002_v12 = vadd.f32 %v999_v36, %v986_v33 }
 0x2d3   : > { %v1019_v2 = vadd.f32 %v1014_v44, %v1003_v34  ;;  %v1018_v55 = vadd.f32 %v1015_v51, %v1002_v12 }
 0x2d5   : > { %v1035_v3 = vadd.f32 %v1030_v62, %v1019_v2  ;;  %v1034_v17 = vadd.f32 %v1031_v16, %v1018_v55 }
 0x2d7   : > { %v1051_v35 = vadd.f32 %v1046_v57, %v1035_v3  ;;  %v1050_v40 = vadd.f32 %v1047_v21, %v1034_v17 }
 0x2d9   : > { %v1067_v24 = vadd.f32 %v1062_v8, %v1051_v35  ;;  %v1066_v42 = vadd.f32 %v1063_v29, %v1050_v40 }
 0x2db   : > { %v1083_v10 = vadd.f32 %v1078_v26, %v1067_v24  ;;  %v1082_v4 = vadd.f32 %v1079_v1, %v1066_v42 }
 0x2dd   : > { %v1092_v9 = vadd.f32 %v1270_v28, %v1083_v10  ;;  %v1091_v5 = vadd.f32 %v1270_v28, %v1082_v4 }
 0x2df   : > { %v1096_v15 = vmul.f32 0.70710677, %v1092_v9  ;;  %v1095_v45 = vmul.f32 0.70710677, %v1091_v5  ;;  %v1094_v53 = vmul.f32 0.5, %v1092_v9  ;;  %v1093_v33 = vmul.f32 0.5, %v1091_v5 }
 0x2e1   : > { %v1098_v41 = vand.u32 2147483647, %v1096_v15  ;;  %v1097_v46 = vand.u32 2147483647, %v1095_v45  ;;  %vm1138_vm13 = vcmp.ge.f32.partialorder %v1096_v15, 0.0  ;;  %vm1137_vm14 = vcmp.ge.f32.partialorder %v1095_v45, 0.0 }
 0x2e3   : > { %v1100_v44 = vmul.f32 0.3275911, %v1098_v41  ;;  %v1099_v50 = vmul.f32 0.3275911, %v1097_v46  ;;  %v1126_v22 = vmul.f32 %v1098_v41, %v1098_v41  ;;  %v1125_v54 = vmul.f32 %v1097_v46, %v1097_v46 }
 0x2e5   : > { %v1102_v52 = vadd.f32 1.0, %v1100_v44  ;;  %v1101_v11 = vadd.f32 1.0, %v1099_v50  ;;  %v1128_v51 = vsub.f32 0.0, %v1126_v22  ;;  %v1127_v62 = vsub.f32 0.0, %v1125_v54 }
 0x2e7   : > { %1349 = vrcp.f32 %v1102_v52  ;;  %v1131_v57 = vmul.f32 1.442695, %v1128_v51  ;;  %v1129_v14 = vmul.f32 1.442695, %v1127_v62 }
 0x2e8   : > { %1351 = vrcp.f32 %v1101_v11 }
 0x2e9   : > { %1353 = vpow2.f32 %v1131_v57 }
 0x2ea   : > { %1355 = vpow2.f32 %v1129_v14 }
 0x2f1   : > { %v1350_v36 = vpop.eup %1349 }
 0x2f2   : > { %v1352_v56 = vpop.eup %1351  ;;  %v1108_v47 = vmul.f32 1.0614054, %v1350_v36 }
 0x2f3   : > { %v1107_v63 = vmul.f32 1.0614054, %v1352_v56  ;;  %v1354_v38 = vpop.eup %1353 }
 0x2f4   : > { %v1110_v0 = vadd.f32 -1.4531521, %v1108_v47  ;;  %v1356_v27 = vpop.eup %1355 }
 0x2f5   : > { %v1109_v6 = vadd.f32 -1.4531521, %v1107_v63 }
 0x2f6   : > { %v1112_v13 = vmul.f32 %v1350_v36, %v1110_v0 }
 0x2f7   : > { %v1111_v61 = vmul.f32 %v1352_v56, %v1109_v6 }
 0x2f8   : > { %v1114_v16 = vadd.f32 1.4214138, %v1112_v13 }
 0x2f9   : > { %v1113_v19 = vadd.f32 1.4214138, %v1111_v61 }
 0x2fa   : > { %v1116_v25 = vmul.f32 %v1350_v36, %v1114_v16 }
 0x2fb   : > { %v1115_v32 = vmul.f32 %v1352_v56, %v1113_v19 }
 0x2fc   : > { %v1118_v21 = vadd.f32 -0.28449672, %v1116_v25 }
 0x2fd   : > { %v1117_v8 = vadd.f32 -0.28449672, %v1115_v32 }
 0x2fe   : > { %v1120_v23 = vmul.f32 %v1350_v36, %v1118_v21 }
 0x2ff   : > { %v1119_v37 = vmul.f32 %v1352_v56, %v1117_v8 }
 0x300   : > { %v1122_v26 = vadd.f32 0.2548296, %v1120_v23 }
 0x301   : > { %v1121_v59 = vadd.f32 0.2548296, %v1119_v37 }
 0x302   : > { %v1124_v29 = vmul.f32 %v1350_v36, %v1122_v26 }
 0x303   : > { %v1123_v1 = vmul.f32 %v1352_v56, %v1121_v59 }
 0x304   : > { %v1134_v48 = vmul.f32 %v1354_v38, %v1124_v29 }
 0x305   : > { %v1133_v30 = vmul.f32 %v1356_v27, %v1123_v1 }
 0x306   : > { %v1136_v39 = vsub.f32 1.0, %v1134_v48 }
 0x307   : > { %v1135_v43 = vsub.f32 1.0, %v1133_v30 }
 0x308   : > { %v1140_v58 = vsub.f32 0.0, %v1136_v39 }
 0x309   : > { %v1139_v31 = vsub.f32 0.0, %v1135_v43 }
 0x30a   : > { %v1142_v7 = vsel %vm1138_vm13, %v1136_v39, %v1140_v58 }
 0x30b   : > { %v1141_v49 = vsel %vm1137_vm14, %v1135_v43, %v1139_v31  ;;  %v1144_v60 = vadd.f32 1.0, %v1142_v7 }
 0x30c   : > { %v1143_v34 = vadd.f32 1.0, %v1141_v49 }
 0x30d   : > { %v1146_v12 = vmul.f32 %v1144_v60, %v1094_v53 }
 0x30e   : > { %v1145_v2 = vmul.f32 %v1143_v34, %v1093_v33 }
 0x30f   : > { %v1148_v55 = vadd.f32 %v1146_v12, %v1459_v18 }
 0x310   : > { %v1147_v3 = vadd.f32 %v1145_v2, %v1461_v20 }
 0x311   : > { %1151 = vst.msk [vmem:[%s322_s9 + $0x8] sm:$0x1] %vm1150_vm15, %v1148_v55 }
 0x312   : > { %1149 = vst.msk [vmem:[%s322_s9] sm:$0xff] %vm335_vm1, %v1147_v3 }
 0x313 PF: > { %s18_s27 = sadd.s32 1, %s1363_s27  }
 0x314   : > { %p15_p4 = scmp.ge.s32.totalorder %s18_s27, 4  }
 0x316   :  { %17 = sbr.rel (!%p15_p4) target bundleno = 1 (0x1), region = 85 }

// kernel: audio_predictor_forward.5
= control target key start
LH: loop header
LB: loop body
LE: loop exit
PB: predicated region body
PF: predicated region fallthrough
CT: control target
= control target key end

     0   :  { %s2641_s25 = smov 0   ;;  %s2897_s0 = inlined_call_operand.vmem [shape: f32[2,9,32], index: 0, kind: input, shape index: {}]   ;;  %s2898_s1 = inlined_call_operand.vmem [shape: f32[1,32], index: 1, kind: input, shape index: {}]   ;;  %s2899_s2 = inlined_call_operand.vmem [shape: f32[1,32], index: 2, kind: input, shape index: {}]   ;;  %s2900_s3 = inlined_call_operand.vmem [shape: f32[32,96], index: 3, kind: input, shape index: {}]   ;;  %s2901_s4 = inlined_call_operand.vmem [shape: f32[1,96], index: 4, kind: input, shape index: {}]   ;;  %s2902_s5 = inlined_call_operand.vmem [shape: f32[32,32], index: 5, kind: input, shape index: {}]   ;;  %s2903_s6 = inlined_call_operand.vmem [shape: f32[1,32], index: 6, kind: input, shape index: {}]   ;;  %s2904_s7 = inlined_call_operand.vmem [shape: f32[1,32], index: 7, kind: input, shape index: {}]   ;;  %s2905_s8 = inlined_call_operand.vmem [shape: f32[1,32], index: 8, kind: input, shape index: {}]   ;;  %s2906_s9 = inlined_call_operand.vmem [shape: f32[32,64], index: 9, kind: input, shape index: {}]   ;;  %s2907_s10 = inlined_call_operand.vmem [shape: f32[1,64], index: 10, kind: input, shape index: {}]   ;;  %s2908_s11 = inlined_call_operand.vmem [shape: f32[64,32], index: 11, kind: input, shape index: {}]   ;;  %s2909_s12 = inlined_call_operand.vmem [shape: f32[1,32], index: 12, kind: input, shape index: {}]   ;;  %s2910_s13 = inlined_call_operand.vmem [shape: f32[2,9,32], index: 13, kind: output, shape index: {}]  }
   0x1 LB: > { %s2111_s26 = sadd.s32 4294967295, %s2557_s25   ;;  %p2115_p0 = scmp.ge.s32.totalorder %s2557_s25, 1  ;;  %s2557_s25 = sphi %s2641_s25, %s23_s25  }
   0x2   : > { %p387_p1 = scmp.lt.s32.totalorder %s2557_s25, 3 }
   0x4   : > { %p388_p2 = pnand %p2115_p0, %p387_p1 }
   0x5   : > { %p431_p3 = scmp.lt.s32.totalorder (!%p388_p2), %s2111_s26, 1  ;;  %vm445_vm0 = vcmask (!%p388_p2), 261120   ;;  %vm449_vm1 = vcmask (!%p388_p2), 253952   ;;  %v490_v14 = vld [vmem:[%s2900_s3] sm:$0xff] (!%p388_p2)  ;;  %v491_v15 = vld [vmem:[%s2900_s3 + $0x8] sm:$0xff] (!%p388_p2)  ;;  %v492_v16 = vld [vmem:[%s2900_s3 + $0x10] sm:$0xff] (!%p388_p2)  ;;  %v582_v61 = vlaneseq (!%p388_p2) }
   0x6   : > { %391 = sbr.rel (%p388_p2) target bundleno = 2992 (0xbb0), region = 72  ;;  %v2357_v17 = vpack.c.bf16 (!%p388_p2), %v491_v15, %v490_v14  ;;  %v493_v18 = vld [vmem:[%s2900_s3 + $0x18] sm:$0xff] (!%p388_p2)  ;;  %v2120_v27 = vld [vmem:[%s2898_s1] ss:$0 sm:$0xff] (!%p388_p2)  ;;  %vm612_vm2 = vcmask (!%p388_p2), 64512   ;;  %s2559_s14 = smov (!%p388_p2), 88  }
   0x7   : > { %v2361_v19 = vpack.c.bf16 (!%p388_p2), %v493_v18, %v492_v16  ;;  %v2121_v29 = vld [vmem:[%s2899_s2] ss:$0 sm:$0xff] (!%p388_p2)  ;;  %s2560_s15 = smov (!%p388_p2), 96   ;;  %s2561_s16 = smov (!%p388_p2), 80   ;;  %vm2709_vm3 = vmpackc.low (!%p388_p2), %vm612_vm2, %vm612_vm2  ;;  %v583_v62 = vshrl.u32 (!%p388_p2), %v582_v61, 7  ;;  %v586_v63 = vand.u32 (!%p388_p2), 127, %v582_v61 }
   0x8   : > { %2358 = vmatprep.subr.bf16.mxu1 (!%p388_p2), %v2357_v17  ;;  %v2122_v36 = vld [vmem:[%s2901_s4] ss:$0 sm:$0xff] (!%p388_p2)  ;;  %s2562_s17 = smov (!%p388_p2), 120   ;;  %s2563_s18 = smov (!%p388_p2), 112   ;;  %vm702_vm5 = vcmask (!%p388_p2), 65536   ;;  %vm698_vm6 = vcmask (!%p388_p2), 72704  }
   0x9   : > { %2360 = vmatpush3.bf16.msra.mxu1 (!%p388_p2), %v2357_v17  ;;  %vm597_vm4 = vcmp.lt.s32.totalorder (!%p388_p2), %v586_v63, 8  ;;  %s2564_s19 = smov (!%p388_p2), 64   ;;  %s2565_s20 = smov (!%p388_p2), 72   ;;  %vm733_vm7 = vcmask (!%p388_p2), 1040384   ;;  %vm2568_vm8 = vmmov (!%p388_p2), 1   ;;  %vm1961_vm12 = vcmask (!%p388_p2), 523264  }
   0xa   : > { %2362 = vmatprep.subr.bf16.mxu1 (!%p388_p2), %v2361_v19  ;;  %s2566_s21 = smov (!%p388_p2), 104   ;;  %s2567_s22 = smov (!%p388_p2), 56   ;;  %vm2755_vm9 = vmpackc.low (!%p388_p2), %vm733_vm7, %vm2568_vm8 }
   0xd   : > { %s2916_s26 = smov (!%p431_p3, %s2111_s26), 1  ;;  %2364 = vmatpush3.bf16.msra.mxu1 %v2361_v19 }
   0xe   : > { %s2172_s27 = sshll.u32 %s2916_s26, 4 }
   0xf   : > { %s435_s30 = scalar_lea.vmem %s2897_s0, %s2172_s27 }
  0x10   : > { %v2657_v0 = vld [vmem:[%s435_s30] sm:$0xff]  ;;  %v2659_v1 = vld [vmem:[%s435_s30 + $0x8] sm:$0x1]  ;;  %s2569_s30 = smov 48  }
  0x11   : > { %v446_v2 = vsel %vm445_vm0, %v2657_v0, 0.0  ;;  %v450_v3 = vsel %vm449_vm1, %v2659_v1, 0.0 }
  0x12   : > { %447 = vadd.xlane.f32.xlu0 %v446_v2  ;;  %v587_v2 = vsub.s32 %v583_v62, %v586_v63 }
  0x16   : > { %451 = vadd.xlane.f32.xlu0 %v450_v3  ;;  %v589_v3 = vcvt.s32.f32 %v587_v2 }
  0x9f   : > { %v448_v4 = vpop.xlane.xlu0 %447 }
  0xa0   : > { %v454_v5 = vmul.f32 0.03125, %v448_v4  ;;  %v591_v4 = vand.u32 2147483647, %v589_v3 }
  0xa2   : > { %v456_v6 = vsub.f32 %v2657_v0, %v454_v5  ;;  %v593_v5 = vsub.f32 0.0, %v591_v4 }
  0xa3   : > { %v452_v7 = vpop.xlane.xlu0 %451 }
  0xa4   : > { %v455_v8 = vmul.f32 0.03125, %v452_v7  ;;  %v458_v9 = vmul.f32 %v456_v6, %v456_v6 }
  0xa6   : > { %v457_v10 = vsub.f32 %v2659_v1, %v455_v8  ;;  %v460_v11 = vsel %vm445_vm0, %v458_v9, 0.0 }
  0xa7   : > { %461 = vadd.xlane.f32.xlu1 %v460_v11 }
  0xa8   : > { %v459_v12 = vmul.f32 %v457_v10, %v457_v10 }
  0xaa   : > { %v463_v13 = vsel %vm449_vm1, %v459_v12, 0.0 }
  0xab   : > { %464 = vadd.xlane.f32.xlu1 %v463_v13 }
 0x134   : > { %v462_v20 = vpop.xlane.xlu1 %461 }
 0x135   : > { %v466_v21 = vmul.f32 0.03125, %v462_v20 }
 0x137   : > { %v468_v22 = vadd.f32 1e-05, %v466_v21 }
 0x138   : > { %v465_v23 = vpop.xlane.xlu1 %464 }
 0x139   : > { %2503 = vrsqrt.f32 %v468_v22  ;;  %v467_v24 = vmul.f32 0.03125, %v465_v23 }
 0x13b   : > { %v469_v25 = vadd.f32 1e-05, %v467_v24 }
 0x13d   : > { %2505 = vrsqrt.f32 %v469_v25 }
 0x143   : > { %v2504_v26 = vpop.eup %2503 }
 0x144   : > { %v472_v28 = vmul.f32 %v2504_v26, %v456_v6  ;;  %v2731_v6 = vsel %vm597_vm4, %v593_v5, 0.0 }
 0x145   : > { %v604_v7 = vmul.f32 0.25, %v2731_v6  ;;  %v812_v13 = vmul.f32 0.0625, %v2731_v6 }
 0x146   : > { %v480_v30 = vmul.f32 %v2120_v27, %v472_v28 }
 0x147   : > { %v2506_v31 = vpop.eup %2505 }
 0x148   : > { %v473_v32 = vmul.f32 %v2506_v31, %v457_v10  ;;  %v488_v33 = vadd.f32 %v2121_v29, %v480_v30 }
 0x14a   : > { %v481_v34 = vmul.f32 %v2120_v27, %v473_v32  ;;  %2248 = vmatprep.mubr.msk.f32.mxu1 %vm445_vm0, %v488_v33 }
 0x14c   : > { %v489_v35 = vadd.f32 %v2121_v29, %v481_v34 }
 0x14e   : > { %2249 = vmatmul.mubr.msk.f32.vlgmr.msra.gmra.mrb[0].mxu1 %vm445_vm0, %v489_v35 }
 0x221   : > { %v2250_v37 = vpop.f32.mrb[0].mxu1 }
 0x222   : > { %v579_v38 = vadd.f32 %v2250_v37, %v2122_v36  ;;  %v573_v39 = vpop.f32.mrb[1].mxu1 }
 0x223   : > { %v574_v40 = vadd.f32 %v2122_v36, %v573_v39 }
 0x224   : > { %v2702_v43 = vmul.f32 0.35355338, %v579_v38 }
 0x225   : > { %v2692_v41 = vpack.i.bf16 %v579_v38, %v574_v40  ;;  %v2694_v42 = vmul.f32 0.35355338, %v574_v40 }
 0x227   : > { %2469 = vrot.lane.b32.xlu1 %v2692_v41, %s2559_s14  ;;  %2464 = vrot.lane.b32.xlu0 %v2692_v41, %s2560_s15 }
 0x228   : > { %2255 = vmatprep.mubr.msk.f32.mxu1 %vm612_vm2, %v2694_v42 }
 0x22b   : > { %2474 = vrot.lane.b32.xlu0 %v2692_v41, %s2561_s16  ;;  %814 = vrot.lane.b32.xlu1 %v2694_v42, %s2562_s17  ;;  %s2570_s16 = smov 40  }
 0x22f   : > { %1182 = vrot.lane.b32.xlu0 %v2702_v43, %s2563_s18  ;;  %816 = vrot.lane.b32.xlu1 %v2702_v43, %s2562_s17 }
 0x233   : > { %1180 = vrot.lane.b32.xlu1 %v2694_v42, %s2563_s18 }
 0x299   : > { %v2470_v44 = vpop.permute.xlu1 %2469  ;;  %v2465_v45 = vpop.permute.xlu0 %2464 }
 0x29a   : > { %v2472_v46 = vunpack.i.h.bf16 %v2470_v44  ;;  %v2471_v47 = vunpack.i.l.bf16 %v2470_v44  ;;  %v2467_v48 = vunpack.i.h.bf16 %v2465_v45  ;;  %v2466_v49 = vunpack.i.l.bf16 %v2465_v45 }
 0x29b   : > { %v1178_v44 = vmul.f32 0.015625, %v2731_v6 }
 0x29c   : > { %v2365_v51 = vpack.c.bf16 %v2467_v48, %v2466_v49  ;;  %v2377_v52 = vpack.c.bf16 %v2472_v46, %v2471_v47 }
 0x29d   : > { %v2475_v53 = vpop.permute.xlu0 %2474  ;;  %v815_v56 = vpop.permute.xlu1 %814 }
 0x29e   : > { %2367 = vmatprep.subr.msk.bf16.mxu1 %vm2709_vm3, %v2365_v51  ;;  %v2477_v54 = vunpack.i.h.bf16 %v2475_v53  ;;  %v2476_v55 = vunpack.i.l.bf16 %v2475_v53 }
 0x29f   : > { %2370 = vmatpush3.bf16.xpose.msk.msra.mxu1 %vm2709_vm3, %v2365_v51 }
 0x2a0   : > { %2379 = vmatprep.subr.msk.bf16.mxu1 %vm2709_vm3, %v2377_v52  ;;  %v2389_v57 = vpack.c.bf16 %v2477_v54, %v2476_v55 }
 0x2a1   : > { %v817_v58 = vpop.permute.xlu1 %816  ;;  %v1183_v60 = vpop.permute.xlu0 %1182 }
 0x2a5   : > { %v1181_v59 = vpop.permute.xlu1 %1180 }
 0x2a6   : > { %2256 = vmatmul.mubr.msk.f32.vlgmr.msra.gmra.mrb[2].mxu1 %vm612_vm2, %v2702_v43 }
 0x2a7   : > { %2382 = vmatpush3.bf16.xpose.msk.msra.mxu1 %vm2709_vm3, %v2377_v52  ;;  %2269 = vmatprep.mubr.msk.f32.mxu1 %vm612_vm2, %v815_v56  ;;  %v2161_v56 = vld [vmem:[%s2903_s6] ss:$0 sm:$0xff] }
 0x2a8   : > { %2391 = vmatprep.subr.msk.bf16.mxu1 %vm2709_vm3, %v2389_v57 }
 0x2ae   : > { %2270 = vmatmul.mubr.msk.f32.vlgmr.msra.gmra.mrb[4].mxu1 %vm612_vm2, %v817_v58 }
 0x2af   : > { %2394 = vmatpush3.bf16.xpose.msk.msra.mxu1 %vm2709_vm3, %v2389_v57  ;;  %2293 = vmatprep.mubr.msk.f32.mxu1 %vm612_vm2, %v1181_v59 }
 0x2b6   : > { %2294 = vmatmul.mubr.msk.f32.vlgmr.msra.gmra.mrb[6].mxu1 %vm612_vm2, %v1183_v60 }
 0x379   : > { %v2257_v8 = vpop.f32.mrb[2].mxu1 }
 0x37a   : > { %v689_v9 = vpop.f32.mrb[3].mxu1  ;;  %v703_v10 = vsel %vm702_vm5, %v2257_v8, -inf }
 0x37b   : > { %v690_v11 = vadd.f32 %v689_v9, %v604_v7  ;;  %704 = vmax.xlane.f32.xlu0 %v703_v10 }
 0x37d   : > { %v699_v12 = vsel %vm698_vm6, %v690_v11, -inf }
 0x37e   : > { %700 = vmax.xlane.f32.xlu1 %v699_v12 }
 0x381   : > { %v2271_v14 = vpop.f32.mrb[4].mxu1 }
 0x382   : > { %v896_v15 = vpop.f32.mrb[5].mxu1  ;;  %v908_v19 = vsel %vm702_vm5, %v2271_v14, -inf }
 0x383   : > { %v897_v16 = vadd.f32 %v896_v15, %v812_v13 }
 0x385   : > { %v905_v17 = vsel %vm698_vm6, %v897_v16, -inf }
 0x386   : > { %906 = vmax.xlane.f32.xlu0 %v905_v17 }
 0x389   : > { %v2738_v18 = vpop.f32.mrb[6].mxu1 }
 0x38a   : > { %v1262_v20 = vpop.f32.mrb[7].mxu1  ;;  %909 = vmax.xlane.f32.xlu0 %v908_v19  ;;  %v1274_v47 = vsel %vm702_vm5, %v2738_v18, -inf }
 0x38b   : > { %v1263_v45 = vadd.f32 %v1262_v20, %v1178_v44 }
 0x38d   : > { %v1271_v46 = vsel %vm698_vm6, %v1263_v45, -inf }
 0x408   : > { %v705_v21 = vpop.xlane.xlu0 %704 }
 0x409   : > { %v707_v22 = vsub.f32 %v2257_v8, %v705_v21 }
 0x40b   : > { %v710_v23 = vmul.f32 1.442695, %v707_v22  ;;  %v701_v24 = vpop.xlane.xlu1 %700 }
 0x40c   : > { %v706_v25 = vsub.f32 %v690_v11, %v701_v24 }
 0x40d   : > { %2507 = vpow2.f32 %v710_v23  ;;  %v1015_v23 = vld [vmem:[%s2902_s5 + $0x8] sm:$0xff] }
 0x40e   : > { %v708_v26 = vmul.f32 1.442695, %v706_v25 }
 0x410   : > { %2509 = vpow2.f32 %v708_v26 }
 0x413   : > { %v907_v27 = vpop.xlane.xlu0 %906 }
 0x414   : > { %v911_v28 = vsub.f32 %v897_v16, %v907_v27 }
 0x416   : > { %v913_v29 = vmul.f32 1.442695, %v911_v28 }
 0x417   : > { %v2508_v30 = vpop.eup %2507  ;;  %v910_v31 = vpop.xlane.xlu0 %909 }
 0x418   : > { %2511 = vpow2.f32 %v913_v29  ;;  %v912_v32 = vsub.f32 %v2271_v14, %v910_v31  ;;  %v715_v33 = vsel %vm702_vm5, %v2508_v30, 0.0 }
 0x419   : > { %716 = vadd.xlane.f32.xlu0 %v715_v33  ;;  %v1465_v33 = vmul.f32 0.00390625, %v2731_v6 }
 0x41a   : > { %v2510_v34 = vpop.eup %2509  ;;  %v915_v35 = vmul.f32 1.442695, %v912_v32 }
 0x41b   : > { %v712_v36 = vsel %vm698_vm6, %v2510_v34, 0.0 }
 0x41c   : > { %2513 = vpow2.f32 %v915_v35  ;;  %713 = vadd.xlane.f32.xlu1 %v712_v36 }
 0x422   : > { %v2512_v37 = vpop.eup %2511 }
 0x423   : > { %v917_v38 = vsel %vm698_vm6, %v2512_v37, 0.0 }
 0x424   : > { %918 = vadd.xlane.f32.xlu1 %v917_v38 }
 0x426   : > { %v2514_v39 = vpop.eup %2513 }
 0x427   : > { %v920_v40 = vsel %vm702_vm5, %v2514_v39, 0.0 }
 0x428   : > { %921 = vadd.xlane.f32.xlu0 %v920_v40 }
 0x435   : > { %2479 = vrot.lane.b32.xlu1 %v2692_v41, %s2564_s19 }
 0x439   : > { %2489 = vrot.lane.b32.xlu1 %v2692_v41, %s2565_s20 }
 0x43d   : > { %1467 = vrot.lane.b32.xlu1 %v2694_v42, %s2566_s21 }
 0x43e   : > { %2484 = vrot.lane.b32.xlu0 %v2692_v41, %s2567_s22 }
 0x441   : > { %1469 = vrot.lane.b32.xlu1 %v2702_v43, %s2566_s21 }
 0x45d   : > { %1272 = vmax.xlane.f32.xlu0 %v1271_v46  ;;  %v1381_v46 = vld [vmem:[%s2902_s5 + $0x10] sm:$0xff] }
 0x465   : > { %1275 = vmax.xlane.f32.xlu1 %v1274_v47 }
 0x4a6   : > { %v717_v49 = vpop.xlane.xlu0 %716 }
 0x4a9   : > { %v714_v48 = vpop.xlane.xlu1 %713 }
 0x4aa   : > { %2515 = vrcp.f32 %v714_v48 }
 0x4ab   : > { %2517 = vrcp.f32 %v717_v49 }
 0x4b1   : > { %v919_v42 = vpop.xlane.xlu1 %918 }
 0x4b2   : > { %2519 = vrcp.f32 %v919_v42 }
 0x4b4   : > { %v2516_v51 = vpop.eup %2515 }
 0x4b5   : > { %v922_v52 = vpop.xlane.xlu0 %921  ;;  %v2480_v43 = vpop.permute.xlu1 %2479  ;;  %v720_v53 = vmul.f32 %v2516_v51, %v2510_v34 }
 0x4b6   : > { %2521 = vrcp.f32 %v922_v52  ;;  %v2482_v54 = vunpack.i.h.bf16 %v2480_v43  ;;  %v2481_v55 = vunpack.i.l.bf16 %v2480_v43  ;;  %v2518_v58 = vpop.eup %2517 }
 0x4b7   : > { %2262 = vmatprep.mubr.msk.f32.mxu0 %vm698_vm6, %v720_v53  ;;  %v721_v7 = vmul.f32 %v2518_v58, %v2508_v30 }
 0x4b8   : > { %v2371_v57 = vpack.c.bf16 %v2482_v54, %v2481_v55 }
 0x4b9   : > { %v2485_v59 = vpop.permute.xlu0 %2484  ;;  %v2490_v60 = vpop.permute.xlu1 %2489 }
 0x4ba   : > { %v2487_v61 = vunpack.i.h.bf16 %v2485_v59  ;;  %v2486_v62 = vunpack.i.l.bf16 %v2485_v59  ;;  %v2492_v63 = vunpack.i.h.bf16 %v2490_v60  ;;  %v2491_v2 = vunpack.i.l.bf16 %v2490_v60  ;;  %2373 = vmatprep.subr.msk.bf16.mxu0 %vm2755_vm9, %v2371_v57 }
 0x4bb   : > { %2376 = vmatpush3.bf16.msk.msra.mxu0 %vm2755_vm9, %v2371_v57 }
 0x4bc   : > { %v2520_v3 = vpop.eup %2519  ;;  %v2383_v4 = vpack.c.bf16 %v2487_v61, %v2486_v62  ;;  %v2401_v5 = vpack.c.bf16 %v2492_v63, %v2491_v2 }
 0x4bd   : > { %v1468_v8 = vpop.permute.xlu1 %1467  ;;  %v925_v9 = vmul.f32 %v2520_v3, %v2512_v37  ;;  %v1668_v3 = vld [vmem:[%s2902_s5 + $0x18] sm:$0xff] }
 0x4be   : > { %2263 = vmatmul.mubr.msk.f32.vlgmr.msra.gmra.mrb[0].mxu0 %vm698_vm6, %v721_v7  ;;  %2385 = vmatprep.subr.msk.bf16.mxu0 %vm2755_vm9, %v2383_v4 }
 0x4bf   : > { %2403 = vmatprep.subr.msk.bf16.mxu1 %vm2709_vm3, %v2401_v5  ;;  %2312 = vmatprep.mubr.msk.f32.mxu1 %vm612_vm2, %v1468_v8 }
 0x4c0   : > { %v2522_v10 = vpop.eup %2521  ;;  %2388 = vmatpush3.bf16.msk.msra.mxu0 %vm2755_vm9, %v2383_v4  ;;  %2276 = vmatprep.mubr.msk.f32.mxu0 %vm698_vm6, %v925_v9 }
 0x4c1   : > { %v926_v11 = vmul.f32 %v2522_v10, %v2514_v39  ;;  %2406 = vmatpush3.bf16.xpose.msk.msra.mxu1 %vm2709_vm3, %v2401_v5  ;;  %v1470_v12 = vpop.permute.xlu1 %1469  ;;  %2279 = vmatprep.subr.mxu0 %v1015_v23 }
 0x4c3   : > { %2277 = vmatmul.mubr.msk.f32.vlgmr.msra.gmra.mrb[2].mxu0 %vm698_vm6, %v926_v11 }
 0x4c4   : > { %2280 = vmatpush3.msra.mxu0 %v1015_v23 }
 0x4c8   : > { %2313 = vmatmul.mubr.msk.f32.vlgmr.msra.gmra.mrb[8].mxu1 %vm612_vm2, %v1470_v12 }
 0x4ea   : > { %v1273_v13 = vpop.xlane.xlu0 %1272 }
 0x4eb   : > { %v1277_v14 = vsub.f32 %v1263_v45, %v1273_v13 }
 0x4ed   : > { %v1279_v17 = vmul.f32 1.442695, %v1277_v14 }
 0x4f2   : > { %v1276_v15 = vpop.xlane.xlu1 %1275 }
 0x4f3   : > { %v1278_v16 = vsub.f32 %v2738_v18, %v1276_v15  ;;  %v811_v18 = vld [vmem:[%s2902_s5] sm:$0xff] }
 0x4f4   : > { %2284 = vmatprep.subr.mxu0 %v811_v18 }
 0x4f5   : > { %v1281_v19 = vmul.f32 1.442695, %v1278_v16 }
 0x4f7   : > { %2523 = vpow2.f32 %v1281_v19 }
 0x4f8   : > { %2525 = vpow2.f32 %v1279_v17 }
 0x501   : > { %v2524_v20 = vpop.eup %2523 }
 0x502   : > { %v1286_v21 = vsel %vm702_vm5, %v2524_v20, 0.0  ;;  %v2526_v22 = vpop.eup %2525 }
 0x503   : > { %1287 = vadd.xlane.f32.xlu0 %v1286_v21  ;;  %v1283_v50 = vsel %vm698_vm6, %v2526_v22, 0.0 }
 0x507   : > { %1284 = vadd.xlane.f32.xlu0 %v1283_v50 }
 0x51d   : > { %2494 = vrot.lane.b32.xlu0 %v2692_v41, %s2569_s30  ;;  %s440_s30 = scalar_lea.vmem %s2910_s13, %s2172_s27 }
 0x590   : > { %v1288_v24 = vpop.xlane.xlu0 %1287 }
 0x591   : > { %v2264_v25 = vpop.f32.mrb[0].mxu0 }
 0x592   : > { %v802_v26 = vpop.f32.mrb[1].mxu0 }
 0x594   : > { %v1285_v27 = vpop.xlane.xlu0 %1284 }
 0x595   : > { %2527 = vrcp.f32 %v1285_v27 }
 0x596   : > { %2529 = vrcp.f32 %v1288_v24  ;;  %v2278_v28 = vpop.f32.mrb[2].mxu0 }
 0x597   : > { %v1006_v29 = vpop.f32.mrb[3].mxu0 }
 0x598   : > { %v2495_v30 = vpop.permute.xlu0 %2494  ;;  %2281 = vmatprep.mubr.msk.f32.mxu0 %vm612_vm2, %v1006_v29  ;;  %v1810_v29 = vld [vmem:[%s2906_s9 + $0x18] sm:$0xff] }
 0x599   : > { %v2497_v31 = vunpack.i.h.bf16 %v2495_v30  ;;  %v2496_v32 = vunpack.i.l.bf16 %v2495_v30  ;;  %2282 = vmatmul.mubr.msk.f32.vlgmr.msra.gmra.mrb[4].mxu0 %vm612_vm2, %v2278_v28  ;;  %v1809_v28 = vld [vmem:[%s2906_s9 + $0x10] sm:$0xff] }
 0x59a   : > { %2286 = vmatprep.mubr.msk.f32.mxu0 %vm612_vm2, %v802_v26  ;;  %2285 = vmatpush3.msra.mxu0 %v811_v18  ;;  %v1808_v26 = vld [vmem:[%s2906_s9 + $0x8] sm:$0xff]  ;;  %v2417_v30 = vpack.c.bf16 %v1810_v29, %v1809_v28 }
 0x59b   : > { %v2395_v34 = vpack.c.bf16 %v2497_v31, %v2496_v32  ;;  %v2314_v35 = vpop.f32.mrb[8].mxu1 }
 0x59c   : > { %v1549_v36 = vpop.f32.mrb[9].mxu1  ;;  %v1561_v45 = vsel %vm702_vm5, %v2314_v35, -inf }
 0x59d   : > { %v1550_v37 = vadd.f32 %v1549_v36, %v1465_v33  ;;  %2397 = vmatprep.subr.msk.bf16.mxu0 %vm2755_vm9, %v2395_v34 }
 0x59f   : > { %v2528_v38 = vpop.eup %2527  ;;  %v1558_v39 = vsel %vm698_vm6, %v1550_v37, -inf }
 0x5a0   : > { %v2530_v40 = vpop.eup %2529  ;;  %1559 = vmax.xlane.f32.xlu1 %v1558_v39  ;;  %v1291_v44 = vmul.f32 %v2528_v38, %v2526_v22  ;;  %v2162_v38 = vld [vmem:[%s2904_s7] ss:$0 sm:$0xff] }
 0x5a1   : > { %2287 = vmatmul.mubr.msk.f32.vlgmr.msra.gmra.mrb[4].mxu0 %vm612_vm2, %v2264_v25  ;;  %v1292_v6 = vmul.f32 %v2530_v40, %v2524_v20  ;;  %v1807_v25 = vld [vmem:[%s2906_s9] sm:$0xff] }
 0x5a2   : > { %2400 = vmatpush3.bf16.msk.msra.mxu0 %vm2755_vm9, %v2395_v34  ;;  %2300 = vmatprep.mubr.msk.f32.mxu0 %vm698_vm6, %v1291_v44  ;;  %v2413_v27 = vpack.c.bf16 %v1808_v26, %v1807_v25  ;;  %v2163_v40 = vld [vmem:[%s2905_s8] ss:$0 sm:$0xff] }
 0x5a3   : > { %2303 = vmatprep.subr.mxu0 %v1381_v46 }
 0x5a4   : > { %1562 = vmax.xlane.f32.xlu1 %v1561_v45  ;;  %2414 = vmatprep.subr.bf16.mxu1 %v2413_v27 }
 0x5a5   : > { %2301 = vmatmul.mubr.msk.f32.vlgmr.msra.gmra.mrb[6].mxu0 %vm698_vm6, %v1292_v6  ;;  %2416 = vmatpush3.bf16.msra.mxu1 %v2413_v27 }
 0x5a6   : > { %2304 = vmatpush3.msra.mxu0 %v1381_v46  ;;  %2418 = vmatprep.subr.bf16.mxu1 %v2417_v30 }
 0x5a9   : > { %2420 = vmatpush3.bf16.msra.mxu1 %v2417_v30 }
 0x62d   : > { %v1560_v47 = vpop.xlane.xlu1 %1559 }
 0x62e   : > { %v1564_v48 = vsub.f32 %v1550_v37, %v1560_v47 }
 0x630   : > { %v1566_v51 = vmul.f32 1.442695, %v1564_v48 }
 0x631   : > { %v1563_v49 = vpop.xlane.xlu1 %1562 }
 0x632   : > { %v1565_v42 = vsub.f32 %v2314_v35, %v1563_v49  ;;  %v1953_v49 = vld [vmem:[%s2908_s11] sm:$0xff] }
 0x634   : > { %v1568_v52 = vmul.f32 1.442695, %v1565_v42  ;;  %v1954_v42 = vld [vmem:[%s2908_s11 + $0x8] sm:$0xff] }
 0x636   : > { %2531 = vpow2.f32 %v1568_v52  ;;  %v1955_v52 = vld [vmem:[%s2908_s11 + $0x10] sm:$0xff] }
 0x637   : > { %2533 = vpow2.f32 %v1566_v51  ;;  %v2421_v51 = vpack.c.bf16 %v1954_v42, %v1953_v49 }
 0x640   : > { %v2532_v43 = vpop.eup %2531 }
 0x641   : > { %v1573_v53 = vsel %vm702_vm5, %v2532_v43, 0.0  ;;  %v2534_v54 = vpop.eup %2533 }
 0x642   : > { %1574 = vadd.xlane.f32.xlu1 %v1573_v53  ;;  %v1570_v55 = vsel %vm698_vm6, %v2534_v54, 0.0 }
 0x646   : > { %1571 = vadd.xlane.f32.xlu1 %v1570_v55  ;;  %v1958_v55 = vld [vmem:[%s2908_s11 + $0x28] sm:$0xff] }
 0x657   : > { %2499 = vrot.lane.b32.xlu1 %v2692_v41, %s2570_s16 }
 0x678   : > { %v2302_v57 = vpop.f32.mrb[6].mxu0 }
 0x679   : > { %v1372_v58 = vpop.f32.mrb[7].mxu0 }
 0x67a   : > { %2305 = vmatprep.mubr.msk.f32.mxu0 %vm612_vm2, %v1372_v58  ;;  %v1959_v58 = vld [vmem:[%s2908_s11 + $0x30] sm:$0xff] }
 0x67b   : > { %2306 = vmatmul.mubr.msk.f32.vlgmr.msra.gmra.mrb[4].mxu0 %vm612_vm2, %v2302_v57 }
 0x6cf   : > { %v1575_v59 = vpop.xlane.xlu1 %1574 }
 0x6d0   : > { %2535 = vrcp.f32 %v1575_v59  ;;  %v1960_v59 = vld [vmem:[%s2908_s11 + $0x38] sm:$0xff] }
 0x6d3   : > { %v1572_v60 = vpop.xlane.xlu1 %1571 }
 0x6d4   : > { %2537 = vrcp.f32 %v1572_v60  ;;  %v2433_v60 = vpack.c.bf16 %v1960_v59, %v1959_v58 }
 0x6d7   : > { %v2500_v61 = vpop.permute.xlu1 %2499 }
 0x6d8   : > { %v2502_v62 = vunpack.i.h.bf16 %v2500_v61  ;;  %v2501_v63 = vunpack.i.l.bf16 %v2500_v61  ;;  %v2164_v61 = vld [vmem:[%s2907_s10] ss:$0 sm:$0xff] }
 0x6da   : > { %v2407_v2 = vpack.c.bf16 %v2502_v62, %v2501_v63  ;;  %v2536_v41 = vpop.eup %2535 }
 0x6db   : > { %v1579_v7 = vmul.f32 %v2536_v41, %v2532_v43  ;;  %v1956_v43 = vld [vmem:[%s2908_s11 + $0x18] sm:$0xff] }
 0x6dc   : > { %2409 = vmatprep.subr.msk.bf16.mxu0 %vm2755_vm9, %v2407_v2  ;;  %v2425_v53 = vpack.c.bf16 %v1956_v43, %v1955_v52 }
 0x6dd   : > { %2412 = vmatpush3.bf16.msk.msra.mxu0 %vm2755_vm9, %v2407_v2 }
 0x6de   : > { %v2538_v4 = vpop.eup %2537  ;;  %2322 = vmatprep.subr.mxu0 %v1668_v3 }
 0x6df   : > { %v1578_v5 = vmul.f32 %v2538_v4, %v2534_v54  ;;  %v1957_v54 = vld [vmem:[%s2908_s11 + $0x20] sm:$0xff] }
 0x6e0   : > { %v2429_v57 = vpack.c.bf16 %v1958_v55, %v1957_v54  ;;  %v2169_v54 = vld [vmem:[%s2909_s12] ss:$0 sm:$0xff] }
 0x6e1   : > { %2319 = vmatprep.mubr.msk.f32.mxu0 %vm698_vm6, %v1578_v5 }
 0x6e2   : > { %2320 = vmatmul.mubr.msk.f32.vlgmr.msra.gmra.mrb[8].mxu0 %vm698_vm6, %v1579_v7 }
 0x6e3   : > { %2323 = vmatpush3.msra.mxu0 %v1668_v3 }
 0x6e4   : > { %2422 = vmatprep.subr.bf16.mxu0 %v2421_v51 }
 0x7b5   : > { %v2321_v8 = vpop.f32.mrb[8].mxu0 }
 0x7b6   : > { %v1659_v9 = vpop.f32.mrb[9].mxu0 }
 0x7b7   : > { %2324 = vmatprep.mubr.msk.f32.mxu0 %vm612_vm2, %v1659_v9 }
 0x7b8   : > { %2325 = vmatmul.mubr.msk.f32.vlgmr.msra.gmra.mrb[4].mxu0 %vm612_vm2, %v2321_v8 }
 0x7b9   : > { %2424 = vmatpush3.bf16.msra.mxu0 %v2421_v51 }
 0x7ba   : > { %2426 = vmatprep.subr.bf16.mxu0 %v2425_v53 }
 0x7bd   : > { %2428 = vmatpush3.bf16.msra.mxu0 %v2425_v53 }
 0x7be   : > { %2430 = vmatprep.subr.bf16.mxu0 %v2429_v57 }
 0x7c1   : > { %2432 = vmatpush3.bf16.msra.mxu0 %v2429_v57 }
 0x7c2   : > { %2434 = vmatprep.subr.bf16.mxu0 %v2433_v60 }
 0x7c5   : > { %2436 = vmatpush3.bf16.msra.mxu0 %v2433_v60 }
 0x88b   : > { %v2326_v10 = vpop.f32.mrb[4].mxu0 }
 0x88c   : > { %v1753_v11 = vadd.f32 %v2326_v10, %v2659_v1  ;;  %v1741_v12 = vpop.f32.mrb[5].mxu0 }
 0x88d   : > { %v1752_v13 = vadd.f32 %v1741_v12, %v2657_v0 }
 0x88e   : > { %v2823_v14 = vadd.f32 %v2161_v56, %v1753_v11 }
 0x88f   : > { %v2825_v15 = vadd.f32 %v2161_v56, %v1752_v13 }
 0x890   : > { %v1768_v16 = vsel %vm449_vm1, %v2823_v14, 0.0 }
 0x891   : > { %1769 = vadd.xlane.f32.xlu1 %v1768_v16  ;;  %v1765_v17 = vsel %vm445_vm0, %v2825_v15, 0.0 }
 0x892   : > { %1766 = vadd.xlane.f32.xlu0 %v1765_v17 }
 0x91e   : > { %v1770_v19 = vpop.xlane.xlu1 %1769 }
 0x91f   : > { %v1772_v20 = vmul.f32 0.03125, %v1770_v19  ;;  %v1767_v21 = vpop.xlane.xlu0 %1766 }
 0x920   : > { %v1771_v22 = vmul.f32 0.03125, %v1767_v21 }
 0x921   : > { %v1774_v1 = vsub.f32 %v2823_v14, %v1772_v20 }
 0x922   : > { %v1773_v0 = vsub.f32 %v2825_v15, %v1771_v22 }
 0x923   : > { %v1776_v18 = vmul.f32 %v1774_v1, %v1774_v1 }
 0x924   : > { %v1775_v50 = vmul.f32 %v1773_v0, %v1773_v0 }
 0x925   : > { %v1780_v24 = vsel %vm449_vm1, %v1776_v18, 0.0 }
 0x926   : > { %v1777_v23 = vsel %vm445_vm0, %v1775_v50, 0.0 }
 0x927   : > { %1778 = vadd.xlane.f32.xlu0 %v1777_v23 }
 0x92b   : > { %1781 = vadd.xlane.f32.xlu0 %v1780_v24 }
 0x9b4   : > { %v1779_v31 = vpop.xlane.xlu0 %1778 }
 0x9b5   : > { %v1783_v32 = vmul.f32 0.03125, %v1779_v31 }
 0x9b7   : > { %v1785_v33 = vadd.f32 1e-05, %v1783_v32 }
 0x9b8   : > { %v1782_v34 = vpop.xlane.xlu0 %1781 }
 0x9b9   : > { %2539 = vrsqrt.f32 %v1785_v33  ;;  %v1784_v35 = vmul.f32 0.03125, %v1782_v34 }
 0x9bb   : > { %v1786_v36 = vadd.f32 1e-05, %v1784_v35 }
 0x9bd   : > { %2541 = vrsqrt.f32 %v1786_v36 }
 0x9c3   : > { %v2540_v37 = vpop.eup %2539 }
 0x9c4   : > { %v1789_v39 = vmul.f32 %v2540_v37, %v1773_v0 }
 0x9c6   : > { %v1797_v44 = vmul.f32 %v2162_v38, %v1789_v39 }
 0x9c7   : > { %v2542_v6 = vpop.eup %2541 }
 0x9c8   : > { %v1790_v45 = vmul.f32 %v2542_v6, %v1774_v1  ;;  %v1805_v46 = vadd.f32 %v2163_v40, %v1797_v44 }
 0x9ca   : > { %v1798_v47 = vmul.f32 %v2162_v38, %v1790_v45  ;;  %2335 = vmatprep.mubr.msk.f32.mxu1 %vm445_vm0, %v1805_v46 }
 0x9cc   : > { %v1806_v48 = vadd.f32 %v2163_v40, %v1798_v47 }
 0x9ce   : > { %2336 = vmatmul.mubr.msk.f32.vlgmr.msra.gmra.mrb[10].mxu1 %vm445_vm0, %v1806_v48 }
 0xaa1   : > { %v2337_v62 = vpop.f32.mrb[10].mxu1 }
 0xaa2   : > { %v1896_v63 = vadd.f32 %v2337_v62, %v2164_v61  ;;  %v1890_v2 = vpop.f32.mrb[11].mxu1 }
 0xaa3   : > { %v1891_v3 = vadd.f32 %v2164_v61, %v1890_v2 }
 0xaa4   : > { %v1902_v41 = vmul.f32 0.70710677, %v1896_v63  ;;  %v1900_v51 = vmul.f32 0.5, %v1896_v63 }
 0xaa5   : > { %v1901_v4 = vmul.f32 0.70710677, %v1891_v3  ;;  %v1899_v49 = vmul.f32 0.5, %v1891_v3 }
 0xaa6   : > { %v1904_v5 = vand.u32 2147483647, %v1902_v41  ;;  %vm1944_vm10 = vcmp.ge.f32.partialorder %v1902_v41, 0.0 }
 0xaa7   : > { %v1903_v7 = vand.u32 2147483647, %v1901_v4  ;;  %vm1943_vm11 = vcmp.ge.f32.partialorder %v1901_v4, 0.0 }
 0xaa8   : > { %v1906_v8 = vmul.f32 0.3275911, %v1904_v5  ;;  %v1932_v11 = vmul.f32 %v1904_v5, %v1904_v5 }
 0xaa9   : > { %v1905_v9 = vmul.f32 0.3275911, %v1903_v7  ;;  %v1931_v12 = vmul.f32 %v1903_v7, %v1903_v7 }
 0xaaa   : > { %v1908_v10 = vadd.f32 1.0, %v1906_v8  ;;  %v1934_v16 = vsub.f32 0.0, %v1932_v11 }
 0xaab   : > { %v1907_v56 = vadd.f32 1.0, %v1905_v9  ;;  %v1933_v20 = vsub.f32 0.0, %v1931_v12 }
 0xaac   : > { %2543 = vrcp.f32 %v1908_v10  ;;  %v1937_v1 = vmul.f32 1.442695, %v1934_v16 }
 0xaad   : > { %2545 = vrcp.f32 %v1907_v56  ;;  %v1935_v23 = vmul.f32 1.442695, %v1933_v20 }
 0xaae   : > { %2547 = vpow2.f32 %v1937_v1 }
 0xaaf   : > { %2549 = vpow2.f32 %v1935_v23 }
 0xab6   : > { %v2544_v13 = vpop.eup %2543 }
 0xab7   : > { %v2546_v17 = vpop.eup %2545  ;;  %v1914_v19 = vmul.f32 1.0614054, %v2544_v13 }
 0xab8   : > { %v1913_v21 = vmul.f32 1.0614054, %v2546_v17  ;;  %v2548_v35 = vpop.eup %2547 }
 0xab9   : > { %v1916_v22 = vadd.f32 -1.4531521, %v1914_v19  ;;  %v2550_v37 = vpop.eup %2549 }
 0xaba   : > { %v1915_v0 = vadd.f32 -1.4531521, %v1913_v21 }
 0xabb   : > { %v1918_v50 = vmul.f32 %v2544_v13, %v1916_v22 }
 0xabc   : > { %v1917_v18 = vmul.f32 %v2546_v17, %v1915_v0 }
 0xabd   : > { %v1920_v24 = vadd.f32 1.4214138, %v1918_v50 }
 0xabe   : > { %v1919_v25 = vadd.f32 1.4214138, %v1917_v18 }
 0xabf   : > { %v1922_v26 = vmul.f32 %v2544_v13, %v1920_v24 }
 0xac0   : > { %v1921_v27 = vmul.f32 %v2546_v17, %v1919_v25 }
 0xac1   : > { %v1924_v28 = vadd.f32 -0.28449672, %v1922_v26 }
 0xac2   : > { %v1923_v29 = vadd.f32 -0.28449672, %v1921_v27 }
 0xac3   : > { %v1926_v30 = vmul.f32 %v2544_v13, %v1924_v28 }
 0xac4   : > { %v1925_v31 = vmul.f32 %v2546_v17, %v1923_v29 }
 0xac5   : > { %v1928_v32 = vadd.f32 0.2548296, %v1926_v30 }
 0xac6   : > { %v1927_v33 = vadd.f32 0.2548296, %v1925_v31 }
 0xac7   : > { %v1930_v34 = vmul.f32 %v2544_v13, %v1928_v32 }
 0xac8   : > { %v1929_v36 = vmul.f32 %v2546_v17, %v1927_v33 }
 0xac9   : > { %v1940_v38 = vmul.f32 %v2548_v35, %v1930_v34 }
 0xaca   : > { %v1939_v39 = vmul.f32 %v2550_v37, %v1929_v36 }
 0xacb   : > { %v1942_v40 = vsub.f32 1.0, %v1940_v38 }
 0xacc   : > { %v1941_v44 = vsub.f32 1.0, %v1939_v39 }
 0xacd   : > { %v1946_v6 = vsub.f32 0.0, %v1942_v40 }
 0xace   : > { %v1945_v45 = vsub.f32 0.0, %v1941_v44 }
 0xacf   : > { %v1948_v46 = vsel %vm1944_vm10, %v1942_v40, %v1946_v6 }
 0xad0   : > { %v1950_v47 = vadd.f32 1.0, %v1948_v46  ;;  %v1947_v48 = vsel %vm1943_vm11, %v1941_v44, %v1945_v45 }
 0xad1   : > { %v1949_v42 = vadd.f32 1.0, %v1947_v48 }
 0xad2   : > { %v1952_v43 = vmul.f32 %v1950_v47, %v1900_v51 }
 0xad3   : > { %v1951_v52 = vmul.f32 %v1949_v42, %v1899_v49 }
 0xad5   : > { %2354 = vmatprep.mubr.msk.f32.mxu0 %vm1961_vm12, %v1951_v52 }
 0xad6   : > { %2355 = vmatmul.mubr.msk.f32.vlgmr.msra.gmra.mrb[10].mxu0 %vm1961_vm12, %v1952_v43 }
 0xba9   : > { %v2356_v53 = vpop.f32.mrb[10].mxu0 }
 0xbaa   : > { %v2044_v55 = vadd.f32 %v2356_v53, %v2823_v14  ;;  %v2034_v57 = vpop.f32.mrb[11].mxu0 }
 0xbab   : > { %v2043_v58 = vadd.f32 %v2034_v57, %v2825_v15 }
 0xbac   : > { %v2053_v59 = vadd.f32 %v2169_v54, %v2044_v55 }
 0xbad   : > { %v2052_v60 = vadd.f32 %v2169_v54, %v2043_v58 }
 0xbae   : > { %2055 = vst.msk [vmem:[%s440_s30 + $0x8] sm:$0x1] %vm449_vm1, %v2053_v59 }
 0xbaf   : > { %2054 = vst.msk [vmem:[%s440_s30] sm:$0xff] %vm445_vm0, %v2052_v60 }
 0xbb0 PF: > { %s23_s25 = sadd.s32 1, %s2557_s25  }
 0xbb1   : > { %p20_p4 = scmp.ge.s32.totalorder %s23_s25, 4  }
 0xbb3   :  { %22 = sbr.rel (!%p20_p4) target bundleno = 1 (0x1), region = 102 }

</bundles_post_ra>
